<compile_context>
chip_gen: v7x
topology: tpu7x:2x2x1
jax: 0.10.0
libtpu: 0.0.40
codegen_flags: <defaults>
</compile_context>

<pallas_src>
import functools

import jax
import jax.numpy as jnp
from jax import lax
from jax.experimental import pallas as pl
from jax.experimental.pallas import tpu as pltpu


def _lstm_recurrence_kernel(xg_ref, whh_ref, w2_ref, b2_ref, out_ref,
                            h_scr, c_scr, *, t_chunk):
    """One grid step == T_CHUNK LSTM timesteps; last step also does Linear + LogSoftmax.

    xg_ref : (t_chunk, 4, B_pad, H)  precomputed x @ W_ih^T + bias, per gate
    whh_ref: (4, H, H)               per-gate W_hh^T (so h @ whh_ref[g])
    w2_ref : (H, T), b2_ref: (1, T)  classifier
    h_scr/c_scr: (B_pad, H) f32 carries, persistent across grid steps
    """
    s = pl.program_id(0)

    @pl.when(s == 0)
    def _():
        h_scr[...] = jnp.zeros_like(h_scr)
        c_scr[...] = jnp.zeros_like(c_scr)

    # Loop-invariant per-gate recurrent weights: static leading-axis slices (no lane cuts).
    w_i = whh_ref[0]
    w_f = whh_ref[1]
    w_g = whh_ref[2]
    w_o = whh_ref[3]

    def step(tt, carry):
        h, c = carry
        xgt = xg_ref[tt]                       # (4, B_pad, H) for this timestep
        gi = xgt[0] + jnp.dot(h, w_i, preferred_element_type=jnp.float32)
        gf = xgt[1] + jnp.dot(h, w_f, preferred_element_type=jnp.float32)
        gg = xgt[2] + jnp.dot(h, w_g, preferred_element_type=jnp.float32)
        go = xgt[3] + jnp.dot(h, w_o, preferred_element_type=jnp.float32)
        i_gate = jax.nn.sigmoid(gi)
        f_gate = jax.nn.sigmoid(gf)
        g_gate = jnp.tanh(gg)
        o_gate = jax.nn.sigmoid(go)
        c_new = f_gate * c + i_gate * g_gate
        h_new = o_gate * jnp.tanh(c_new)
        return h_new, c_new

    h0 = h_scr[...]
    c0 = c_scr[...]
    h_f, c_f = lax.fori_loop(0, t_chunk, step, (h0, c0), unroll=True)
    h_scr[...] = h_f
    c_scr[...] = c_f

    @pl.when(s == pl.num_programs(0) - 1)
    def _():
        # hidden2tag: h_n @ W2^T + b2  -> (B_pad, T), then LogSoftmax over dim=1.
        tag = jnp.dot(h_f, w2_ref[...], preferred_element_type=jnp.float32) + b2_ref[...]
        m = jnp.max(tag, axis=1, keepdims=True)
        shifted = tag - m
        lse = jnp.log(jnp.sum(jnp.exp(shifted), axis=1, keepdims=True))
        out_ref[...] = shifted - lse


def _pick_chunk(seq_len, max_chunk=8):
    """Largest divisor of seq_len that is <= max_chunk (timesteps per grid step)."""
    for c in range(min(seq_len, max_chunk), 0, -1):
        if seq_len % c == 0:
            return c
    return 1


def lstm_classifier_forward(x, params, *, t_chunk=None):
    """x: (seq_len, batch, input_size) float32.  Returns (batch, tagset_size) log-probs."""
    seq_len, batch, input_size = x.shape
    wih_t = params["wih_t"]            # (I, 4H)
    whh_g = params["whh_g"]            # (4, H, H)  per-gate W_hh^T
    bias = params["bias"]              # (4, H)     = b_ih + b_hh, per gate
    w2_t = params["w2_t"]              # (H, T)
    b2 = params["b2"]                  # (1, T)
    hidden_dim = whh_g.shape[-1]
    tagset_size = w2_t.shape[1]

    if t_chunk is None:
        t_chunk = _pick_chunk(seq_len)
    assert seq_len % t_chunk == 0, "seq_len must be divisible by t_chunk"

    # --- 1) Hoist the time-parallel input projection: one big matmul over all timesteps. ---
    # (S*B, I) @ (I, 4H) -> (S, B, 4, H); add the (4, H) bias once (hoisted, not per step).
    xg = jnp.dot(x.reshape(seq_len * batch, input_size), wih_t,
                 preferred_element_type=jnp.float32)
    xg = xg.reshape(seq_len, batch, 4, hidden_dim) + bias
    # Gate-major layout so the kernel slices gates on a leading axis: (S, 4, B, H).
    xg = jnp.transpose(xg, (0, 2, 1, 3))

    # --- 2) Pad batch up to the f32 sublane count (8) so vregs/MXU rows are not mostly idle. ---
    b_pad = max(8, ((batch + 7) // 8) * 8)
    if b_pad != batch:
        xg = jnp.pad(xg, ((0, 0), (0, 0), (0, b_pad - batch), (0, 0)))

    kernel = functools.partial(_lstm_recurrence_kernel, t_chunk=t_chunk)

    out_padded = pl.pallas_call(
        kernel,
        out_shape=jax.ShapeDtypeStruct((b_pad, tagset_size), jnp.float32),
        grid_spec=pltpu.PrefetchScalarGridSpec(
            num_scalar_prefetch=0,
            grid=(seq_len // t_chunk,),
            in_specs=[
                # one chunk of precomputed gate inputs per grid iteration
                pl.BlockSpec((t_chunk, 4, b_pad, hidden_dim), lambda s: (s, 0, 0, 0)),
                # weights: whole arrays, constant index_map -> resident across the loop
                pl.BlockSpec(whh_g.shape, lambda s: (0, 0, 0)),
                pl.BlockSpec(w2_t.shape, lambda s: (0, 0)),
                pl.BlockSpec(b2.shape, lambda s: (0, 0)),
            ],
            out_specs=pl.BlockSpec((b_pad, tagset_size), lambda s: (0, 0)),
            scratch_shapes=[
                pltpu.VMEM((b_pad, hidden_dim), jnp.float32),   # h carry
                pltpu.VMEM((b_pad, hidden_dim), jnp.float32),   # c carry
            ],
        ),
        compiler_params=pltpu.CompilerParams(
            dimension_semantics=("arbitrary",),      # sequential recurrence over seq chunks
            vmem_limit_bytes=32 * 1024 * 1024,       # explicit VMEM budget (v7x-safe)
        ),
    )(xg, whh_g, w2_t, b2)

    return out_padded[:batch]


def init_params(key, input_size, hidden_dim, tagset_size):
    """Deterministic init mimicking PyTorch's U(-1/sqrt(H), 1/sqrt(H)); gate order i,f,g,o."""
    k = 1.0 / jnp.sqrt(jnp.float32(hidden_dim))
    keys = jax.random.split(key, 6)
    w_ih = jax.random.uniform(keys[0], (4 * hidden_dim, input_size), jnp.float32, -k, k)
    w_hh = jax.random.uniform(keys[1], (4 * hidden_dim, hidden_dim), jnp.float32, -k, k)
    b_ih = jax.random.uniform(keys[2], (4 * hidden_dim,), jnp.float32, -k, k)
    b_hh = jax.random.uniform(keys[3], (4 * hidden_dim,), jnp.float32, -k, k)
    w2 = jax.random.uniform(keys[4], (tagset_size, hidden_dim), jnp.float32, -k, k)
    b2 = jax.random.uniform(keys[5], (tagset_size,), jnp.float32, -k, k)
    H = hidden_dim
    return {
        "wih_t": w_ih.T,                                      # (I, 4H)
        "whh_g": w_hh.reshape(4, H, H).transpose(0, 2, 1),    # (4, H, H): whh_g[g] = W_hh[g].T
        "bias": (b_ih + b_hh).reshape(4, H),                  # (4, H)
        "w2_t": w2.T,                                         # (H, T)
        "b2": b2.reshape(1, -1),                              # (1, T)
    }


def _reference_forward(x, params):
    """Pure-JAX reference of the same math (for sanity checking)."""
    seq_len, batch, _ = x.shape
    H = params["whh_g"].shape[-1]
    wih_t, whh_g, bias = params["wih_t"], params["whh_g"], params["bias"]
    h = jnp.zeros((batch, H), jnp.float32)
    c = jnp.zeros((batch, H), jnp.float32)
    for t in range(seq_len):
        xg = (x[t] @ wih_t).reshape(batch, 4, H) + bias
        gi = xg[:, 0] + h @ whh_g[0]
        gf = xg[:, 1] + h @ whh_g[1]
        gg = xg[:, 2] + h @ whh_g[2]
        go = xg[:, 3] + h @ whh_g[3]
        i_g = jax.nn.sigmoid(gi)
        f_g = jax.nn.sigmoid(gf)
        g_g = jnp.tanh(gg)
        o_g = jax.nn.sigmoid(go)
        c = f_g * c + i_g * g_g
        h = o_g * jnp.tanh(c)
    tag = h @ params["w2_t"] + params["b2"]
    return jax.nn.log_softmax(tag, axis=1)


if __name__ == "__main__":
    SEQ_LEN, BATCH, INPUT_SIZE, HIDDEN_DIM, TAGSET = 8, 2, 16, 32, 8

    key = jax.random.PRNGKey(0)
    k_x, k_p = jax.random.split(key)
    x = jax.random.normal(k_x, (SEQ_LEN, BATCH, INPUT_SIZE), jnp.float32)
    params = init_params(k_p, INPUT_SIZE, HIDDEN_DIM, TAGSET)

    out = lstm_classifier_forward(x, params)
    out = jax.block_until_ready(out)

    ref = _reference_forward(x, params)
    assert out.shape == (BATCH, TAGSET)
    assert jnp.allclose(out, ref, atol=1e-5, rtol=1e-5), "mismatch vs JAX reference"

    print("KERNEL_OK")
</pallas_src>

<mosaic_0001>
module attributes {stable_mosaic.version = 11 : i64} {
  func.func @_lstm_recurrence_kernel(%arg0: i32, %arg1: memref<8x4x8x32xf32, #tpu.memory_space<vmem>>, %arg2: memref<4x32x32xf32, #tpu.memory_space<vmem>>, %arg3: memref<32x8xf32, #tpu.memory_space<vmem>>, %arg4: memref<1x8xf32, #tpu.memory_space<vmem>>, %arg5: memref<8x8xf32, #tpu.memory_space<vmem>>, %arg6: memref<8x32xf32, #tpu.memory_space<vmem>>, %arg7: memref<8x32xf32, #tpu.memory_space<vmem>>) attributes {dimension_semantics = [#tpu.dimension_semantics<arbitrary>], iteration_bounds = array<i64: 1>, scalar_prefetch = 0 : i64, scratch_operands = 2 : i64, tpu.core_type = #tpu.core_type<tc>, window_params = [{transform_indices = @transform_0, window_bounds = array<i64: 8, 4, 8, 32>}, {pipeline_mode = #tpu.pipeline_mode<synchronous>, transform_indices = @transform_1, window_bounds = array<i64: 4, 32, 32>}, {pipeline_mode = #tpu.pipeline_mode<synchronous>, transform_indices = @transform_2, window_bounds = array<i64: 32, 8>}, {pipeline_mode = #tpu.pipeline_mode<synchronous>, transform_indices = @transform_3, window_bounds = array<i64: 1, 8>}, {pipeline_mode = #tpu.pipeline_mode<synchronous>, transform_indices = @transform_4, window_bounds = array<i64: 8, 8>}]} {
    %c0_i32 = arith.constant 0 : i32
    %0 = arith.cmpi eq, %arg0, %c0_i32 : i32
    %1 = arith.extui %0 : i1 to i32
    %c0_i32_0 = arith.constant 0 : i32
    %2 = arith.cmpi ne, %1, %c0_i32_0 : i32
    scf.if %2 {
      %cst_99 = arith.constant 0.000000e+00 : f32
      %338 = vector.broadcast %cst_99 : f32 to vector<8x32xf32>
      %c0_100 = arith.constant 0 : index
      %c0_101 = arith.constant 0 : index
      %339 = vector.load %arg6[%c0_100, %c0_101] : memref<8x32xf32, #tpu.memory_space<vmem>>, vector<8x32xf32>
      tpu.vector_store %arg6[%c0_100, %c0_101], %338 {strides = array<i32>} : memref<8x32xf32, #tpu.memory_space<vmem>>, vector<8x32xf32>,
      %cst_102 = arith.constant 0.000000e+00 : f32
      %340 = vector.broadcast %cst_102 : f32 to vector<8x32xf32>
      %c0_103 = arith.constant 0 : index
      %c0_104 = arith.constant 0 : index
      %341 = vector.load %arg7[%c0_103, %c0_104] : memref<8x32xf32, #tpu.memory_space<vmem>>, vector<8x32xf32>
      tpu.vector_store %arg7[%c0_103, %c0_104], %340 {strides = array<i32>} : memref<8x32xf32, #tpu.memory_space<vmem>>, vector<8x32xf32>,
    } else {
    }
    %c0 = arith.constant 0 : index
    %c0_1 = arith.constant 0 : index
    %c0_2 = arith.constant 0 : index
    %3 = vector.load %arg2[%c0, %c0_1, %c0_2] : memref<4x32x32xf32, #tpu.memory_space<vmem>>, vector<1x32x32xf32>
    %4 = vector.shape_cast %3 : vector<1x32x32xf32> to vector<32x32xf32>
    %c1 = arith.constant 1 : index
    %c0_3 = arith.constant 0 : index
    %c0_4 = arith.constant 0 : index
    %5 = vector.load %arg2[%c1, %c0_3, %c0_4] : memref<4x32x32xf32, #tpu.memory_space<vmem>>, vector<1x32x32xf32>
    %6 = vector.shape_cast %5 : vector<1x32x32xf32> to vector<32x32xf32>
    %c2 = arith.constant 2 : index
    %c0_5 = arith.constant 0 : index
    %c0_6 = arith.constant 0 : index
    %7 = vector.load %arg2[%c2, %c0_5, %c0_6] : memref<4x32x32xf32, #tpu.memory_space<vmem>>, vector<1x32x32xf32>
    %8 = vector.shape_cast %7 : vector<1x32x32xf32> to vector<32x32xf32>
    %c3 = arith.constant 3 : index
    %c0_7 = arith.constant 0 : index
    %c0_8 = arith.constant 0 : index
    %9 = vector.load %arg2[%c3, %c0_7, %c0_8] : memref<4x32x32xf32, #tpu.memory_space<vmem>>, vector<1x32x32xf32>
    %10 = vector.shape_cast %9 : vector<1x32x32xf32> to vector<32x32xf32>
    %c0_9 = arith.constant 0 : index
    %c0_10 = arith.constant 0 : index
    %11 = vector.load %arg6[%c0_9, %c0_10] : memref<8x32xf32, #tpu.memory_space<vmem>>, vector<8x32xf32>
    %c0_11 = arith.constant 0 : index
    %c0_12 = arith.constant 0 : index
    %12 = vector.load %arg7[%c0_11, %c0_12] : memref<8x32xf32, #tpu.memory_space<vmem>>, vector<8x32xf32>
    %c0_i32_13 = arith.constant 0 : i32
    %13 = arith.index_cast %c0_i32_13 : i32 to index
    %c0_14 = arith.constant 0 : index
    %c0_15 = arith.constant 0 : index
    %c0_16 = arith.constant 0 : index
    %14 = vector.load %arg1[%13, %c0_14, %c0_15, %c0_16] : memref<8x4x8x32xf32, #tpu.memory_space<vmem>>, vector<1x4x8x32xf32>
    %15 = vector.shape_cast %14 : vector<1x4x8x32xf32> to vector<4x8x32xf32>
    %16 = vector.extract_strided_slice %15 {offsets = [0, 0, 0], sizes = [1, 8, 32], strides = [1, 1, 1]} : vector<4x8x32xf32> to vector<1x8x32xf32>
    %17 = vector.shape_cast %16 : vector<1x8x32xf32> to vector<8x32xf32>
    %cst = arith.constant dense<0.000000e+00> : vector<8x32xf32>
    %18 = tpu.matmul %11, %4, %cst {dimension_numbers = #tpu.dot_dimension_numbers<[1], [0], [0], [1], [0, 0, 1, 1], [], []>} : vector<8x32xf32>, vector<32x32xf32>, vector<8x32xf32> -> vector<8x32xf32>
    %19 = arith.addf %17, %18 : vector<8x32xf32>
    %20 = vector.extract_strided_slice %15 {offsets = [1, 0, 0], sizes = [1, 8, 32], strides = [1, 1, 1]} : vector<4x8x32xf32> to vector<1x8x32xf32>
    %21 = vector.shape_cast %20 : vector<1x8x32xf32> to vector<8x32xf32>
    %cst_17 = arith.constant dense<0.000000e+00> : vector<8x32xf32>
    %22 = tpu.matmul %11, %6, %cst_17 {dimension_numbers = #tpu.dot_dimension_numbers<[1], [0], [0], [1], [0, 0, 1, 1], [], []>} : vector<8x32xf32>, vector<32x32xf32>, vector<8x32xf32> -> vector<8x32xf32>
    %23 = arith.addf %21, %22 : vector<8x32xf32>
    %24 = vector.extract_strided_slice %15 {offsets = [2, 0, 0], sizes = [1, 8, 32], strides = [1, 1, 1]} : vector<4x8x32xf32> to vector<1x8x32xf32>
    %25 = vector.shape_cast %24 : vector<1x8x32xf32> to vector<8x32xf32>
    %cst_18 = arith.constant dense<0.000000e+00> : vector<8x32xf32>
    %26 = tpu.matmul %11, %8, %cst_18 {dimension_numbers = #tpu.dot_dimension_numbers<[1], [0], [0], [1], [0, 0, 1, 1], [], []>} : vector<8x32xf32>, vector<32x32xf32>, vector<8x32xf32> -> vector<8x32xf32>
    %27 = arith.addf %25, %26 : vector<8x32xf32>
    %28 = vector.extract_strided_slice %15 {offsets = [3, 0, 0], sizes = [1, 8, 32], strides = [1, 1, 1]} : vector<4x8x32xf32> to vector<1x8x32xf32>
    %29 = vector.shape_cast %28 : vector<1x8x32xf32> to vector<8x32xf32>
    %cst_19 = arith.constant dense<0.000000e+00> : vector<8x32xf32>
    %30 = tpu.matmul %11, %10, %cst_19 {dimension_numbers = #tpu.dot_dimension_numbers<[1], [0], [0], [1], [0, 0, 1, 1], [], []>} : vector<8x32xf32>, vector<32x32xf32>, vector<8x32xf32> -> vector<8x32xf32>
    %31 = arith.addf %29, %30 : vector<8x32xf32>
    %32 = arith.negf %19 : vector<8x32xf32>
    %33 = math.exp %32 : vector<8x32xf32>
    %cst_20 = arith.constant 1.000000e+00 : f32
    %34 = vector.broadcast %cst_20 : f32 to vector<8x32xf32>
    %35 = arith.addf %34, %33 : vector<8x32xf32>
    %36 = arith.divf %34, %35 : vector<8x32xf32>
    %37 = arith.negf %23 : vector<8x32xf32>
    %38 = math.exp %37 : vector<8x32xf32>
    %cst_21 = arith.constant 1.000000e+00 : f32
    %39 = vector.broadcast %cst_21 : f32 to vector<8x32xf32>
    %40 = arith.addf %39, %38 : vector<8x32xf32>
    %41 = arith.divf %39, %40 : vector<8x32xf32>
    %42 = math.tanh %27 : vector<8x32xf32>
    %43 = arith.negf %31 : vector<8x32xf32>
    %44 = math.exp %43 : vector<8x32xf32>
    %cst_22 = arith.constant 1.000000e+00 : f32
    %45 = vector.broadcast %cst_22 : f32 to vector<8x32xf32>
    %46 = arith.addf %45, %44 : vector<8x32xf32>
    %47 = arith.divf %45, %46 : vector<8x32xf32>
    %48 = arith.mulf %41, %12 : vector<8x32xf32>
    %49 = arith.mulf %36, %42 : vector<8x32xf32>
    %50 = arith.addf %48, %49 : vector<8x32xf32>
    %51 = math.tanh %50 : vector<8x32xf32>
    %52 = arith.mulf %47, %51 : vector<8x32xf32>
    %c1_i32 = arith.constant 1 : i32
    %53 = arith.index_cast %c1_i32 : i32 to index
    %c0_23 = arith.constant 0 : index
    %c0_24 = arith.constant 0 : index
    %c0_25 = arith.constant 0 : index
    %54 = vector.load %arg1[%53, %c0_23, %c0_24, %c0_25] : memref<8x4x8x32xf32, #tpu.memory_space<vmem>>, vector<1x4x8x32xf32>
    %55 = vector.shape_cast %54 : vector<1x4x8x32xf32> to vector<4x8x32xf32>
    %56 = vector.extract_strided_slice %55 {offsets = [0, 0, 0], sizes = [1, 8, 32], strides = [1, 1, 1]} : vector<4x8x32xf32> to vector<1x8x32xf32>
    %57 = vector.shape_cast %56 : vector<1x8x32xf32> to vector<8x32xf32>
    %cst_26 = arith.constant dense<0.000000e+00> : vector<8x32xf32>
    %58 = tpu.matmul %52, %4, %cst_26 {dimension_numbers = #tpu.dot_dimension_numbers<[1], [0], [0], [1], [0, 0, 1, 1], [], []>} : vector<8x32xf32>, vector<32x32xf32>, vector<8x32xf32> -> vector<8x32xf32>
    %59 = arith.addf %57, %58 : vector<8x32xf32>
    %60 = vector.extract_strided_slice %55 {offsets = [1, 0, 0], sizes = [1, 8, 32], strides = [1, 1, 1]} : vector<4x8x32xf32> to vector<1x8x32xf32>
    %61 = vector.shape_cast %60 : vector<1x8x32xf32> to vector<8x32xf32>
    %cst_27 = arith.constant dense<0.000000e+00> : vector<8x32xf32>
    %62 = tpu.matmul %52, %6, %cst_27 {dimension_numbers = #tpu.dot_dimension_numbers<[1], [0], [0], [1], [0, 0, 1, 1], [], []>} : vector<8x32xf32>, vector<32x32xf32>, vector<8x32xf32> -> vector<8x32xf32>
    %63 = arith.addf %61, %62 : vector<8x32xf32>
    %64 = vector.extract_strided_slice %55 {offsets = [2, 0, 0], sizes = [1, 8, 32], strides = [1, 1, 1]} : vector<4x8x32xf32> to vector<1x8x32xf32>
    %65 = vector.shape_cast %64 : vector<1x8x32xf32> to vector<8x32xf32>
    %cst_28 = arith.constant dense<0.000000e+00> : vector<8x32xf32>
    %66 = tpu.matmul %52, %8, %cst_28 {dimension_numbers = #tpu.dot_dimension_numbers<[1], [0], [0], [1], [0, 0, 1, 1], [], []>} : vector<8x32xf32>, vector<32x32xf32>, vector<8x32xf32> -> vector<8x32xf32>
    %67 = arith.addf %65, %66 : vector<8x32xf32>
    %68 = vector.extract_strided_slice %55 {offsets = [3, 0, 0], sizes = [1, 8, 32], strides = [1, 1, 1]} : vector<4x8x32xf32> to vector<1x8x32xf32>
    %69 = vector.shape_cast %68 : vector<1x8x32xf32> to vector<8x32xf32>
    %cst_29 = arith.constant dense<0.000000e+00> : vector<8x32xf32>
    %70 = tpu.matmul %52, %10, %cst_29 {dimension_numbers = #tpu.dot_dimension_numbers<[1], [0], [0], [1], [0, 0, 1, 1], [], []>} : vector<8x32xf32>, vector<32x32xf32>, vector<8x32xf32> -> vector<8x32xf32>
    %71 = arith.addf %69, %70 : vector<8x32xf32>
    %72 = arith.negf %59 : vector<8x32xf32>
    %73 = math.exp %72 : vector<8x32xf32>
    %cst_30 = arith.constant 1.000000e+00 : f32
    %74 = vector.broadcast %cst_30 : f32 to vector<8x32xf32>
    %75 = arith.addf %74, %73 : vector<8x32xf32>
    %76 = arith.divf %74, %75 : vector<8x32xf32>
    %77 = arith.negf %63 : vector<8x32xf32>
    %78 = math.exp %77 : vector<8x32xf32>
    %cst_31 = arith.constant 1.000000e+00 : f32
    %79 = vector.broadcast %cst_31 : f32 to vector<8x32xf32>
    %80 = arith.addf %79, %78 : vector<8x32xf32>
    %81 = arith.divf %79, %80 : vector<8x32xf32>
    %82 = math.tanh %67 : vector<8x32xf32>
    %83 = arith.negf %71 : vector<8x32xf32>
    %84 = math.exp %83 : vector<8x32xf32>
    %cst_32 = arith.constant 1.000000e+00 : f32
    %85 = vector.broadcast %cst_32 : f32 to vector<8x32xf32>
    %86 = arith.addf %85, %84 : vector<8x32xf32>
    %87 = arith.divf %85, %86 : vector<8x32xf32>
    %88 = arith.mulf %81, %50 : vector<8x32xf32>
    %89 = arith.mulf %76, %82 : vector<8x32xf32>
    %90 = arith.addf %88, %89 : vector<8x32xf32>
    %91 = math.tanh %90 : vector<8x32xf32>
    %92 = arith.mulf %87, %91 : vector<8x32xf32>
    %c2_i32 = arith.constant 2 : i32
    %93 = arith.index_cast %c2_i32 : i32 to index
    %c0_33 = arith.constant 0 : index
    %c0_34 = arith.constant 0 : index
    %c0_35 = arith.constant 0 : index
    %94 = vector.load %arg1[%93, %c0_33, %c0_34, %c0_35] : memref<8x4x8x32xf32, #tpu.memory_space<vmem>>, vector<1x4x8x32xf32>
    %95 = vector.shape_cast %94 : vector<1x4x8x32xf32> to vector<4x8x32xf32>
    %96 = vector.extract_strided_slice %95 {offsets = [0, 0, 0], sizes = [1, 8, 32], strides = [1, 1, 1]} : vector<4x8x32xf32> to vector<1x8x32xf32>
    %97 = vector.shape_cast %96 : vector<1x8x32xf32> to vector<8x32xf32>
    %cst_36 = arith.constant dense<0.000000e+00> : vector<8x32xf32>
    %98 = tpu.matmul %92, %4, %cst_36 {dimension_numbers = #tpu.dot_dimension_numbers<[1], [0], [0], [1], [0, 0, 1, 1], [], []>} : vector<8x32xf32>, vector<32x32xf32>, vector<8x32xf32> -> vector<8x32xf32>
    %99 = arith.addf %97, %98 : vector<8x32xf32>
    %100 = vector.extract_strided_slice %95 {offsets = [1, 0, 0], sizes = [1, 8, 32], strides = [1, 1, 1]} : vector<4x8x32xf32> to vector<1x8x32xf32>
    %101 = vector.shape_cast %100 : vector<1x8x32xf32> to vector<8x32xf32>
    %cst_37 = arith.constant dense<0.000000e+00> : vector<8x32xf32>
    %102 = tpu.matmul %92, %6, %cst_37 {dimension_numbers = #tpu.dot_dimension_numbers<[1], [0], [0], [1], [0, 0, 1, 1], [], []>} : vector<8x32xf32>, vector<32x32xf32>, vector<8x32xf32> -> vector<8x32xf32>
    %103 = arith.addf %101, %102 : vector<8x32xf32>
    %104 = vector.extract_strided_slice %95 {offsets = [2, 0, 0], sizes = [1, 8, 32], strides = [1, 1, 1]} : vector<4x8x32xf32> to vector<1x8x32xf32>
    %105 = vector.shape_cast %104 : vector<1x8x32xf32> to vector<8x32xf32>
    %cst_38 = arith.constant dense<0.000000e+00> : vector<8x32xf32>
    %106 = tpu.matmul %92, %8, %cst_38 {dimension_numbers = #tpu.dot_dimension_numbers<[1], [0], [0], [1], [0, 0, 1, 1], [], []>} : vector<8x32xf32>, vector<32x32xf32>, vector<8x32xf32> -> vector<8x32xf32>
    %107 = arith.addf %105, %106 : vector<8x32xf32>
    %108 = vector.extract_strided_slice %95 {offsets = [3, 0, 0], sizes = [1, 8, 32], strides = [1, 1, 1]} : vector<4x8x32xf32> to vector<1x8x32xf32>
    %109 = vector.shape_cast %108 : vector<1x8x32xf32> to vector<8x32xf32>
    %cst_39 = arith.constant dense<0.000000e+00> : vector<8x32xf32>
    %110 = tpu.matmul %92, %10, %cst_39 {dimension_numbers = #tpu.dot_dimension_numbers<[1], [0], [0], [1], [0, 0, 1, 1], [], []>} : vector<8x32xf32>, vector<32x32xf32>, vector<8x32xf32> -> vector<8x32xf32>
    %111 = arith.addf %109, %110 : vector<8x32xf32>
    %112 = arith.negf %99 : vector<8x32xf32>
    %113 = math.exp %112 : vector<8x32xf32>
    %cst_40 = arith.constant 1.000000e+00 : f32
    %114 = vector.broadcast %cst_40 : f32 to vector<8x32xf32>
    %115 = arith.addf %114, %113 : vector<8x32xf32>
    %116 = arith.divf %114, %115 : vector<8x32xf32>
    %117 = arith.negf %103 : vector<8x32xf32>
    %118 = math.exp %117 : vector<8x32xf32>
    %cst_41 = arith.constant 1.000000e+00 : f32
    %119 = vector.broadcast %cst_41 : f32 to vector<8x32xf32>
    %120 = arith.addf %119, %118 : vector<8x32xf32>
    %121 = arith.divf %119, %120 : vector<8x32xf32>
    %122 = math.tanh %107 : vector<8x32xf32>
    %123 = arith.negf %111 : vector<8x32xf32>
    %124 = math.exp %123 : vector<8x32xf32>
    %cst_42 = arith.constant 1.000000e+00 : f32
    %125 = vector.broadcast %cst_42 : f32 to vector<8x32xf32>
    %126 = arith.addf %125, %124 : vector<8x32xf32>
    %127 = arith.divf %125, %126 : vector<8x32xf32>
    %128 = arith.mulf %121, %90 : vector<8x32xf32>
    %129 = arith.mulf %116, %122 : vector<8x32xf32>
    %130 = arith.addf %128, %129 : vector<8x32xf32>
    %131 = math.tanh %130 : vector<8x32xf32>
    %132 = arith.mulf %127, %131 : vector<8x32xf32>
    %c3_i32 = arith.constant 3 : i32
    %133 = arith.index_cast %c3_i32 : i32 to index
    %c0_43 = arith.constant 0 : index
    %c0_44 = arith.constant 0 : index
    %c0_45 = arith.constant 0 : index
    %134 = vector.load %arg1[%133, %c0_43, %c0_44, %c0_45] : memref<8x4x8x32xf32, #tpu.memory_space<vmem>>, vector<1x4x8x32xf32>
    %135 = vector.shape_cast %134 : vector<1x4x8x32xf32> to vector<4x8x32xf32>
    %136 = vector.extract_strided_slice %135 {offsets = [0, 0, 0], sizes = [1, 8, 32], strides = [1, 1, 1]} : vector<4x8x32xf32> to vector<1x8x32xf32>
    %137 = vector.shape_cast %136 : vector<1x8x32xf32> to vector<8x32xf32>
    %cst_46 = arith.constant dense<0.000000e+00> : vector<8x32xf32>
    %138 = tpu.matmul %132, %4, %cst_46 {dimension_numbers = #tpu.dot_dimension_numbers<[1], [0], [0], [1], [0, 0, 1, 1], [], []>} : vector<8x32xf32>, vector<32x32xf32>, vector<8x32xf32> -> vector<8x32xf32>
    %139 = arith.addf %137, %138 : vector<8x32xf32>
    %140 = vector.extract_strided_slice %135 {offsets = [1, 0, 0], sizes = [1, 8, 32], strides = [1, 1, 1]} : vector<4x8x32xf32> to vector<1x8x32xf32>
    %141 = vector.shape_cast %140 : vector<1x8x32xf32> to vector<8x32xf32>
    %cst_47 = arith.constant dense<0.000000e+00> : vector<8x32xf32>
    %142 = tpu.matmul %132, %6, %cst_47 {dimension_numbers = #tpu.dot_dimension_numbers<[1], [0], [0], [1], [0, 0, 1, 1], [], []>} : vector<8x32xf32>, vector<32x32xf32>, vector<8x32xf32> -> vector<8x32xf32>
    %143 = arith.addf %141, %142 : vector<8x32xf32>
    %144 = vector.extract_strided_slice %135 {offsets = [2, 0, 0], sizes = [1, 8, 32], strides = [1, 1, 1]} : vector<4x8x32xf32> to vector<1x8x32xf32>
    %145 = vector.shape_cast %144 : vector<1x8x32xf32> to vector<8x32xf32>
    %cst_48 = arith.constant dense<0.000000e+00> : vector<8x32xf32>
    %146 = tpu.matmul %132, %8, %cst_48 {dimension_numbers = #tpu.dot_dimension_numbers<[1], [0], [0], [1], [0, 0, 1, 1], [], []>} : vector<8x32xf32>, vector<32x32xf32>, vector<8x32xf32> -> vector<8x32xf32>
    %147 = arith.addf %145, %146 : vector<8x32xf32>
    %148 = vector.extract_strided_slice %135 {offsets = [3, 0, 0], sizes = [1, 8, 32], strides = [1, 1, 1]} : vector<4x8x32xf32> to vector<1x8x32xf32>
    %149 = vector.shape_cast %148 : vector<1x8x32xf32> to vector<8x32xf32>
    %cst_49 = arith.constant dense<0.000000e+00> : vector<8x32xf32>
    %150 = tpu.matmul %132, %10, %cst_49 {dimension_numbers = #tpu.dot_dimension_numbers<[1], [0], [0], [1], [0, 0, 1, 1], [], []>} : vector<8x32xf32>, vector<32x32xf32>, vector<8x32xf32> -> vector<8x32xf32>
    %151 = arith.addf %149, %150 : vector<8x32xf32>
    %152 = arith.negf %139 : vector<8x32xf32>
    %153 = math.exp %152 : vector<8x32xf32>
    %cst_50 = arith.constant 1.000000e+00 : f32
    %154 = vector.broadcast %cst_50 : f32 to vector<8x32xf32>
    %155 = arith.addf %154, %153 : vector<8x32xf32>
    %156 = arith.divf %154, %155 : vector<8x32xf32>
    %157 = arith.negf %143 : vector<8x32xf32>
    %158 = math.exp %157 : vector<8x32xf32>
    %cst_51 = arith.constant 1.000000e+00 : f32
    %159 = vector.broadcast %cst_51 : f32 to vector<8x32xf32>
    %160 = arith.addf %159, %158 : vector<8x32xf32>
    %161 = arith.divf %159, %160 : vector<8x32xf32>
    %162 = math.tanh %147 : vector<8x32xf32>
    %163 = arith.negf %151 : vector<8x32xf32>
    %164 = math.exp %163 : vector<8x32xf32>
    %cst_52 = arith.constant 1.000000e+00 : f32
    %165 = vector.broadcast %cst_52 : f32 to vector<8x32xf32>
    %166 = arith.addf %165, %164 : vector<8x32xf32>
    %167 = arith.divf %165, %166 : vector<8x32xf32>
    %168 = arith.mulf %161, %130 : vector<8x32xf32>
    %169 = arith.mulf %156, %162 : vector<8x32xf32>
    %170 = arith.addf %168, %169 : vector<8x32xf32>
    %171 = math.tanh %170 : vector<8x32xf32>
    %172 = arith.mulf %167, %171 : vector<8x32xf32>
    %c4_i32 = arith.constant 4 : i32
    %173 = arith.index_cast %c4_i32 : i32 to index
    %c0_53 = arith.constant 0 : index
    %c0_54 = arith.constant 0 : index
    %c0_55 = arith.constant 0 : index
    %174 = vector.load %arg1[%173, %c0_53, %c0_54, %c0_55] : memref<8x4x8x32xf32, #tpu.memory_space<vmem>>, vector<1x4x8x32xf32>
    %175 = vector.shape_cast %174 : vector<1x4x8x32xf32> to vector<4x8x32xf32>
    %176 = vector.extract_strided_slice %175 {offsets = [0, 0, 0], sizes = [1, 8, 32], strides = [1, 1, 1]} : vector<4x8x32xf32> to vector<1x8x32xf32>
    %177 = vector.shape_cast %176 : vector<1x8x32xf32> to vector<8x32xf32>
    %cst_56 = arith.constant dense<0.000000e+00> : vector<8x32xf32>
    %178 = tpu.matmul %172, %4, %cst_56 {dimension_numbers = #tpu.dot_dimension_numbers<[1], [0], [0], [1], [0, 0, 1, 1], [], []>} : vector<8x32xf32>, vector<32x32xf32>, vector<8x32xf32> -> vector<8x32xf32>
    %179 = arith.addf %177, %178 : vector<8x32xf32>
    %180 = vector.extract_strided_slice %175 {offsets = [1, 0, 0], sizes = [1, 8, 32], strides = [1, 1, 1]} : vector<4x8x32xf32> to vector<1x8x32xf32>
    %181 = vector.shape_cast %180 : vector<1x8x32xf32> to vector<8x32xf32>
    %cst_57 = arith.constant dense<0.000000e+00> : vector<8x32xf32>
    %182 = tpu.matmul %172, %6, %cst_57 {dimension_numbers = #tpu.dot_dimension_numbers<[1], [0], [0], [1], [0, 0, 1, 1], [], []>} : vector<8x32xf32>, vector<32x32xf32>, vector<8x32xf32> -> vector<8x32xf32>
    %183 = arith.addf %181, %182 : vector<8x32xf32>
    %184 = vector.extract_strided_slice %175 {offsets = [2, 0, 0], sizes = [1, 8, 32], strides = [1, 1, 1]} : vector<4x8x32xf32> to vector<1x8x32xf32>
    %185 = vector.shape_cast %184 : vector<1x8x32xf32> to vector<8x32xf32>
    %cst_58 = arith.constant dense<0.000000e+00> : vector<8x32xf32>
    %186 = tpu.matmul %172, %8, %cst_58 {dimension_numbers = #tpu.dot_dimension_numbers<[1], [0], [0], [1], [0, 0, 1, 1], [], []>} : vector<8x32xf32>, vector<32x32xf32>, vector<8x32xf32> -> vector<8x32xf32>
    %187 = arith.addf %185, %186 : vector<8x32xf32>
    %188 = vector.extract_strided_slice %175 {offsets = [3, 0, 0], sizes = [1, 8, 32], strides = [1, 1, 1]} : vector<4x8x32xf32> to vector<1x8x32xf32>
    %189 = vector.shape_cast %188 : vector<1x8x32xf32> to vector<8x32xf32>
    %cst_59 = arith.constant dense<0.000000e+00> : vector<8x32xf32>
    %190 = tpu.matmul %172, %10, %cst_59 {dimension_numbers = #tpu.dot_dimension_numbers<[1], [0], [0], [1], [0, 0, 1, 1], [], []>} : vector<8x32xf32>, vector<32x32xf32>, vector<8x32xf32> -> vector<8x32xf32>
    %191 = arith.addf %189, %190 : vector<8x32xf32>
    %192 = arith.negf %179 : vector<8x32xf32>
    %193 = math.exp %192 : vector<8x32xf32>
    %cst_60 = arith.constant 1.000000e+00 : f32
    %194 = vector.broadcast %cst_60 : f32 to vector<8x32xf32>
    %195 = arith.addf %194, %193 : vector<8x32xf32>
    %196 = arith.divf %194, %195 : vector<8x32xf32>
    %197 = arith.negf %183 : vector<8x32xf32>
    %198 = math.exp %197 : vector<8x32xf32>
    %cst_61 = arith.constant 1.000000e+00 : f32
    %199 = vector.broadcast %cst_61 : f32 to vector<8x32xf32>
    %200 = arith.addf %199, %198 : vector<8x32xf32>
    %201 = arith.divf %199, %200 : vector<8x32xf32>
    %202 = math.tanh %187 : vector<8x32xf32>
    %203 = arith.negf %191 : vector<8x32xf32>
    %204 = math.exp %203 : vector<8x32xf32>
    %cst_62 = arith.constant 1.000000e+00 : f32
    %205 = vector.broadcast %cst_62 : f32 to vector<8x32xf32>
    %206 = arith.addf %205, %204 : vector<8x32xf32>
    %207 = arith.divf %205, %206 : vector<8x32xf32>
    %208 = arith.mulf %201, %170 : vector<8x32xf32>
    %209 = arith.mulf %196, %202 : vector<8x32xf32>
    %210 = arith.addf %208, %209 : vector<8x32xf32>
    %211 = math.tanh %210 : vector<8x32xf32>
    %212 = arith.mulf %207, %211 : vector<8x32xf32>
    %c5_i32 = arith.constant 5 : i32
    %213 = arith.index_cast %c5_i32 : i32 to index
    %c0_63 = arith.constant 0 : index
    %c0_64 = arith.constant 0 : index
    %c0_65 = arith.constant 0 : index
    %214 = vector.load %arg1[%213, %c0_63, %c0_64, %c0_65] : memref<8x4x8x32xf32, #tpu.memory_space<vmem>>, vector<1x4x8x32xf32>
    %215 = vector.shape_cast %214 : vector<1x4x8x32xf32> to vector<4x8x32xf32>
    %216 = vector.extract_strided_slice %215 {offsets = [0, 0, 0], sizes = [1, 8, 32], strides = [1, 1, 1]} : vector<4x8x32xf32> to vector<1x8x32xf32>
    %217 = vector.shape_cast %216 : vector<1x8x32xf32> to vector<8x32xf32>
    %cst_66 = arith.constant dense<0.000000e+00> : vector<8x32xf32>
    %218 = tpu.matmul %212, %4, %cst_66 {dimension_numbers = #tpu.dot_dimension_numbers<[1], [0], [0], [1], [0, 0, 1, 1], [], []>} : vector<8x32xf32>, vector<32x32xf32>, vector<8x32xf32> -> vector<8x32xf32>
    %219 = arith.addf %217, %218 : vector<8x32xf32>
    %220 = vector.extract_strided_slice %215 {offsets = [1, 0, 0], sizes = [1, 8, 32], strides = [1, 1, 1]} : vector<4x8x32xf32> to vector<1x8x32xf32>
    %221 = vector.shape_cast %220 : vector<1x8x32xf32> to vector<8x32xf32>
    %cst_67 = arith.constant dense<0.000000e+00> : vector<8x32xf32>
    %222 = tpu.matmul %212, %6, %cst_67 {dimension_numbers = #tpu.dot_dimension_numbers<[1], [0], [0], [1], [0, 0, 1, 1], [], []>} : vector<8x32xf32>, vector<32x32xf32>, vector<8x32xf32> -> vector<8x32xf32>
    %223 = arith.addf %221, %222 : vector<8x32xf32>
    %224 = vector.extract_strided_slice %215 {offsets = [2, 0, 0], sizes = [1, 8, 32], strides = [1, 1, 1]} : vector<4x8x32xf32> to vector<1x8x32xf32>
    %225 = vector.shape_cast %224 : vector<1x8x32xf32> to vector<8x32xf32>
    %cst_68 = arith.constant dense<0.000000e+00> : vector<8x32xf32>
    %226 = tpu.matmul %212, %8, %cst_68 {dimension_numbers = #tpu.dot_dimension_numbers<[1], [0], [0], [1], [0, 0, 1, 1], [], []>} : vector<8x32xf32>, vector<32x32xf32>, vector<8x32xf32> -> vector<8x32xf32>
    %227 = arith.addf %225, %226 : vector<8x32xf32>
    %228 = vector.extract_strided_slice %215 {offsets = [3, 0, 0], sizes = [1, 8, 32], strides = [1, 1, 1]} : vector<4x8x32xf32> to vector<1x8x32xf32>
    %229 = vector.shape_cast %228 : vector<1x8x32xf32> to vector<8x32xf32>
    %cst_69 = arith.constant dense<0.000000e+00> : vector<8x32xf32>
    %230 = tpu.matmul %212, %10, %cst_69 {dimension_numbers = #tpu.dot_dimension_numbers<[1], [0], [0], [1], [0, 0, 1, 1], [], []>} : vector<8x32xf32>, vector<32x32xf32>, vector<8x32xf32> -> vector<8x32xf32>
    %231 = arith.addf %229, %230 : vector<8x32xf32>
    %232 = arith.negf %219 : vector<8x32xf32>
    %233 = math.exp %232 : vector<8x32xf32>
    %cst_70 = arith.constant 1.000000e+00 : f32
    %234 = vector.broadcast %cst_70 : f32 to vector<8x32xf32>
    %235 = arith.addf %234, %233 : vector<8x32xf32>
    %236 = arith.divf %234, %235 : vector<8x32xf32>
    %237 = arith.negf %223 : vector<8x32xf32>
    %238 = math.exp %237 : vector<8x32xf32>
    %cst_71 = arith.constant 1.000000e+00 : f32
    %239 = vector.broadcast %cst_71 : f32 to vector<8x32xf32>
    %240 = arith.addf %239, %238 : vector<8x32xf32>
    %241 = arith.divf %239, %240 : vector<8x32xf32>
    %242 = math.tanh %227 : vector<8x32xf32>
    %243 = arith.negf %231 : vector<8x32xf32>
    %244 = math.exp %243 : vector<8x32xf32>
    %cst_72 = arith.constant 1.000000e+00 : f32
    %245 = vector.broadcast %cst_72 : f32 to vector<8x32xf32>
    %246 = arith.addf %245, %244 : vector<8x32xf32>
    %247 = arith.divf %245, %246 : vector<8x32xf32>
    %248 = arith.mulf %241, %210 : vector<8x32xf32>
    %249 = arith.mulf %236, %242 : vector<8x32xf32>
    %250 = arith.addf %248, %249 : vector<8x32xf32>
    %251 = math.tanh %250 : vector<8x32xf32>
    %252 = arith.mulf %247, %251 : vector<8x32xf32>
    %c6_i32 = arith.constant 6 : i32
    %253 = arith.index_cast %c6_i32 : i32 to index
    %c0_73 = arith.constant 0 : index
    %c0_74 = arith.constant 0 : index
    %c0_75 = arith.constant 0 : index
    %254 = vector.load %arg1[%253, %c0_73, %c0_74, %c0_75] : memref<8x4x8x32xf32, #tpu.memory_space<vmem>>, vector<1x4x8x32xf32>
    %255 = vector.shape_cast %254 : vector<1x4x8x32xf32> to vector<4x8x32xf32>
    %256 = vector.extract_strided_slice %255 {offsets = [0, 0, 0], sizes = [1, 8, 32], strides = [1, 1, 1]} : vector<4x8x32xf32> to vector<1x8x32xf32>
    %257 = vector.shape_cast %256 : vector<1x8x32xf32> to vector<8x32xf32>
    %cst_76 = arith.constant dense<0.000000e+00> : vector<8x32xf32>
    %258 = tpu.matmul %252, %4, %cst_76 {dimension_numbers = #tpu.dot_dimension_numbers<[1], [0], [0], [1], [0, 0, 1, 1], [], []>} : vector<8x32xf32>, vector<32x32xf32>, vector<8x32xf32> -> vector<8x32xf32>
    %259 = arith.addf %257, %258 : vector<8x32xf32>
    %260 = vector.extract_strided_slice %255 {offsets = [1, 0, 0], sizes = [1, 8, 32], strides = [1, 1, 1]} : vector<4x8x32xf32> to vector<1x8x32xf32>
    %261 = vector.shape_cast %260 : vector<1x8x32xf32> to vector<8x32xf32>
    %cst_77 = arith.constant dense<0.000000e+00> : vector<8x32xf32>
    %262 = tpu.matmul %252, %6, %cst_77 {dimension_numbers = #tpu.dot_dimension_numbers<[1], [0], [0], [1], [0, 0, 1, 1], [], []>} : vector<8x32xf32>, vector<32x32xf32>, vector<8x32xf32> -> vector<8x32xf32>
    %263 = arith.addf %261, %262 : vector<8x32xf32>
    %264 = vector.extract_strided_slice %255 {offsets = [2, 0, 0], sizes = [1, 8, 32], strides = [1, 1, 1]} : vector<4x8x32xf32> to vector<1x8x32xf32>
    %265 = vector.shape_cast %264 : vector<1x8x32xf32> to vector<8x32xf32>
    %cst_78 = arith.constant dense<0.000000e+00> : vector<8x32xf32>
    %266 = tpu.matmul %252, %8, %cst_78 {dimension_numbers = #tpu.dot_dimension_numbers<[1], [0], [0], [1], [0, 0, 1, 1], [], []>} : vector<8x32xf32>, vector<32x32xf32>, vector<8x32xf32> -> vector<8x32xf32>
    %267 = arith.addf %265, %266 : vector<8x32xf32>
    %268 = vector.extract_strided_slice %255 {offsets = [3, 0, 0], sizes = [1, 8, 32], strides = [1, 1, 1]} : vector<4x8x32xf32> to vector<1x8x32xf32>
    %269 = vector.shape_cast %268 : vector<1x8x32xf32> to vector<8x32xf32>
    %cst_79 = arith.constant dense<0.000000e+00> : vector<8x32xf32>
    %270 = tpu.matmul %252, %10, %cst_79 {dimension_numbers = #tpu.dot_dimension_numbers<[1], [0], [0], [1], [0, 0, 1, 1], [], []>} : vector<8x32xf32>, vector<32x32xf32>, vector<8x32xf32> -> vector<8x32xf32>
    %271 = arith.addf %269, %270 : vector<8x32xf32>
    %272 = arith.negf %259 : vector<8x32xf32>
    %273 = math.exp %272 : vector<8x32xf32>
    %cst_80 = arith.constant 1.000000e+00 : f32
    %274 = vector.broadcast %cst_80 : f32 to vector<8x32xf32>
    %275 = arith.addf %274, %273 : vector<8x32xf32>
    %276 = arith.divf %274, %275 : vector<8x32xf32>
    %277 = arith.negf %263 : vector<8x32xf32>
    %278 = math.exp %277 : vector<8x32xf32>
    %cst_81 = arith.constant 1.000000e+00 : f32
    %279 = vector.broadcast %cst_81 : f32 to vector<8x32xf32>
    %280 = arith.addf %279, %278 : vector<8x32xf32>
    %281 = arith.divf %279, %280 : vector<8x32xf32>
    %282 = math.tanh %267 : vector<8x32xf32>
    %283 = arith.negf %271 : vector<8x32xf32>
    %284 = math.exp %283 : vector<8x32xf32>
    %cst_82 = arith.constant 1.000000e+00 : f32
    %285 = vector.broadcast %cst_82 : f32 to vector<8x32xf32>
    %286 = arith.addf %285, %284 : vector<8x32xf32>
    %287 = arith.divf %285, %286 : vector<8x32xf32>
    %288 = arith.mulf %281, %250 : vector<8x32xf32>
    %289 = arith.mulf %276, %282 : vector<8x32xf32>
    %290 = arith.addf %288, %289 : vector<8x32xf32>
    %291 = math.tanh %290 : vector<8x32xf32>
    %292 = arith.mulf %287, %291 : vector<8x32xf32>
    %c7_i32 = arith.constant 7 : i32
    %293 = arith.index_cast %c7_i32 : i32 to index
    %c0_83 = arith.constant 0 : index
    %c0_84 = arith.constant 0 : index
    %c0_85 = arith.constant 0 : index
    %294 = vector.load %arg1[%293, %c0_83, %c0_84, %c0_85] : memref<8x4x8x32xf32, #tpu.memory_space<vmem>>, vector<1x4x8x32xf32>
    %295 = vector.shape_cast %294 : vector<1x4x8x32xf32> to vector<4x8x32xf32>
    %296 = vector.extract_strided_slice %295 {offsets = [0, 0, 0], sizes = [1, 8, 32], strides = [1, 1, 1]} : vector<4x8x32xf32> to vector<1x8x32xf32>
    %297 = vector.shape_cast %296 : vector<1x8x32xf32> to vector<8x32xf32>
    %cst_86 = arith.constant dense<0.000000e+00> : vector<8x32xf32>
    %298 = tpu.matmul %292, %4, %cst_86 {dimension_numbers = #tpu.dot_dimension_numbers<[1], [0], [0], [1], [0, 0, 1, 1], [], []>} : vector<8x32xf32>, vector<32x32xf32>, vector<8x32xf32> -> vector<8x32xf32>
    %299 = arith.addf %297, %298 : vector<8x32xf32>
    %300 = vector.extract_strided_slice %295 {offsets = [1, 0, 0], sizes = [1, 8, 32], strides = [1, 1, 1]} : vector<4x8x32xf32> to vector<1x8x32xf32>
    %301 = vector.shape_cast %300 : vector<1x8x32xf32> to vector<8x32xf32>
    %cst_87 = arith.constant dense<0.000000e+00> : vector<8x32xf32>
    %302 = tpu.matmul %292, %6, %cst_87 {dimension_numbers = #tpu.dot_dimension_numbers<[1], [0], [0], [1], [0, 0, 1, 1], [], []>} : vector<8x32xf32>, vector<32x32xf32>, vector<8x32xf32> -> vector<8x32xf32>
    %303 = arith.addf %301, %302 : vector<8x32xf32>
    %304 = vector.extract_strided_slice %295 {offsets = [2, 0, 0], sizes = [1, 8, 32], strides = [1, 1, 1]} : vector<4x8x32xf32> to vector<1x8x32xf32>
    %305 = vector.shape_cast %304 : vector<1x8x32xf32> to vector<8x32xf32>
    %cst_88 = arith.constant dense<0.000000e+00> : vector<8x32xf32>
    %306 = tpu.matmul %292, %8, %cst_88 {dimension_numbers = #tpu.dot_dimension_numbers<[1], [0], [0], [1], [0, 0, 1, 1], [], []>} : vector<8x32xf32>, vector<32x32xf32>, vector<8x32xf32> -> vector<8x32xf32>
    %307 = arith.addf %305, %306 : vector<8x32xf32>
    %308 = vector.extract_strided_slice %295 {offsets = [3, 0, 0], sizes = [1, 8, 32], strides = [1, 1, 1]} : vector<4x8x32xf32> to vector<1x8x32xf32>
    %309 = vector.shape_cast %308 : vector<1x8x32xf32> to vector<8x32xf32>
    %cst_89 = arith.constant dense<0.000000e+00> : vector<8x32xf32>
    %310 = tpu.matmul %292, %10, %cst_89 {dimension_numbers = #tpu.dot_dimension_numbers<[1], [0], [0], [1], [0, 0, 1, 1], [], []>} : vector<8x32xf32>, vector<32x32xf32>, vector<8x32xf32> -> vector<8x32xf32>
    %311 = arith.addf %309, %310 : vector<8x32xf32>
    %312 = arith.negf %299 : vector<8x32xf32>
    %313 = math.exp %312 : vector<8x32xf32>
    %cst_90 = arith.constant 1.000000e+00 : f32
    %314 = vector.broadcast %cst_90 : f32 to vector<8x32xf32>
    %315 = arith.addf %314, %313 : vector<8x32xf32>
    %316 = arith.divf %314, %315 : vector<8x32xf32>
    %317 = arith.negf %303 : vector<8x32xf32>
    %318 = math.exp %317 : vector<8x32xf32>
    %cst_91 = arith.constant 1.000000e+00 : f32
    %319 = vector.broadcast %cst_91 : f32 to vector<8x32xf32>
    %320 = arith.addf %319, %318 : vector<8x32xf32>
    %321 = arith.divf %319, %320 : vector<8x32xf32>
    %322 = math.tanh %307 : vector<8x32xf32>
    %323 = arith.negf %311 : vector<8x32xf32>
    %324 = math.exp %323 : vector<8x32xf32>
    %cst_92 = arith.constant 1.000000e+00 : f32
    %325 = vector.broadcast %cst_92 : f32 to vector<8x32xf32>
    %326 = arith.addf %325, %324 : vector<8x32xf32>
    %327 = arith.divf %325, %326 : vector<8x32xf32>
    %328 = arith.mulf %321, %290 : vector<8x32xf32>
    %329 = arith.mulf %316, %322 : vector<8x32xf32>
    %330 = arith.addf %328, %329 : vector<8x32xf32>
    %331 = math.tanh %330 : vector<8x32xf32>
    %332 = arith.mulf %327, %331 : vector<8x32xf32>
    %c8_i32 = arith.constant 8 : i32
    %c0_93 = arith.constant 0 : index
    %c0_94 = arith.constant 0 : index
    %333 = vector.load %arg6[%c0_93, %c0_94] : memref<8x32xf32, #tpu.memory_space<vmem>>, vector<8x32xf32>
    tpu.vector_store %arg6[%c0_93, %c0_94], %332 {strides = array<i32>} : memref<8x32xf32, #tpu.memory_space<vmem>>, vector<8x32xf32>,
    %c0_95 = arith.constant 0 : index
    %c0_96 = arith.constant 0 : index
    %334 = vector.load %arg7[%c0_95, %c0_96] : memref<8x32xf32, #tpu.memory_space<vmem>>, vector<8x32xf32>
    tpu.vector_store %arg7[%c0_95, %c0_96], %330 {strides = array<i32>} : memref<8x32xf32, #tpu.memory_space<vmem>>, vector<8x32xf32>,
    %c0_i32_97 = arith.constant 0 : i32
    %335 = arith.cmpi eq, %arg0, %c0_i32_97 : i32
    %336 = arith.extui %335 : i1 to i32
    %c0_i32_98 = arith.constant 0 : i32
    %337 = arith.cmpi ne, %336, %c0_i32_98 : i32
    scf.if %337 {
      %c0_99 = arith.constant 0 : index
      %c0_100 = arith.constant 0 : index
      %338 = vector.load %arg3[%c0_99, %c0_100] : memref<32x8xf32, #tpu.memory_space<vmem>>, vector<32x8xf32>
      %cst_101 = arith.constant dense<0.000000e+00> : vector<8x8xf32>
      %339 = tpu.matmul %332, %338, %cst_101 {dimension_numbers = #tpu.dot_dimension_numbers<[1], [0], [0], [1], [0, 0, 1, 1], [], []>} : vector<8x32xf32>, vector<32x8xf32>, vector<8x8xf32> -> vector<8x8xf32>
      %c0_102 = arith.constant 0 : index
      %c0_103 = arith.constant 0 : index
      %340 = vector.load %arg4[%c0_102, %c0_103] : memref<1x8xf32, #tpu.memory_space<vmem>>, vector<1x8xf32>
      %341 = vector.broadcast %340 : vector<1x8xf32> to vector<8x8xf32>
      %342 = arith.addf %339, %341 : vector<8x8xf32>
      %cst_104 = arith.constant dense<0xFF800000> : vector<8xf32>
      %343 = vector.multi_reduction <maximumf>, %342, %cst_104 [1] : vector<8x8xf32> to vector<8xf32>
      %344 = vector.shape_cast %343 : vector<8xf32> to vector<8x1xf32>
      %345 = vector.broadcast %344 : vector<8x1xf32> to vector<8x8xf32>
      %346 = arith.subf %342, %345 : vector<8x8xf32>
      %347 = math.exp %346 : vector<8x8xf32>
      %cst_105 = arith.constant dense<0.000000e+00> : vector<8xf32>
      %348 = vector.multi_reduction <add>, %347, %cst_105 [1] : vector<8x8xf32> to vector<8xf32>
      %349 = vector.shape_cast %348 : vector<8xf32> to vector<8x1xf32>
      %350 = math.log %349 : vector<8x1xf32>
      %351 = vector.broadcast %350 : vector<8x1xf32> to vector<8x8xf32>
      %352 = arith.subf %346, %351 : vector<8x8xf32>
      %c0_106 = arith.constant 0 : index
      %c0_107 = arith.constant 0 : index
      %353 = vector.load %arg5[%c0_106, %c0_107] : memref<8x8xf32, #tpu.memory_space<vmem>>, vector<8x8xf32>
      tpu.vector_store %arg5[%c0_106, %c0_107], %352 {strides = array<i32>} : memref<8x8xf32, #tpu.memory_space<vmem>>, vector<8x8xf32>,
    } else {
    }
    return
  }
  func.func @transform_0(%arg0: i32) -> (i32, i32, i32, i32) {
    %c0_i32 = arith.constant 0 : i32
    %c0_i32_0 = arith.constant 0 : i32
    %c0_i32_1 = arith.constant 0 : i32
    %c0_i32_2 = arith.constant 0 : i32
    return %arg0, %c0_i32, %c0_i32_0, %c0_i32_1 : i32, i32, i32, i32
  }
  func.func @transform_1(%arg0: i32) -> (i32, i32, i32) {
    %c0_i32 = arith.constant 0 : i32
    %c0_i32_0 = arith.constant 0 : i32
    %c0_i32_1 = arith.constant 0 : i32
    %c0_i32_2 = arith.constant 0 : i32
    return %c0_i32, %c0_i32_0, %c0_i32_1 : i32, i32, i32
  }
  func.func @transform_2(%arg0: i32) -> (i32, i32) {
    %c0_i32 = arith.constant 0 : i32
    %c0_i32_0 = arith.constant 0 : i32
    %c0_i32_1 = arith.constant 0 : i32
    return %c0_i32, %c0_i32_0 : i32, i32
  }
  func.func @transform_3(%arg0: i32) -> (i32, i32) {
    %c0_i32 = arith.constant 0 : i32
    %c0_i32_0 = arith.constant 0 : i32
    %c0_i32_1 = arith.constant 0 : i32
    return %c0_i32, %c0_i32_0 : i32, i32
  }
  func.func @transform_4(%arg0: i32) -> (i32, i32) {
    %c0_i32 = arith.constant 0 : i32
    %c0_i32_0 = arith.constant 0 : i32
    %c0_i32_1 = arith.constant 0 : i32
    return %c0_i32, %c0_i32_0 : i32, i32
  }
}

</mosaic_0001>

<bundles_post_ra>
// kernel: tpu_custom_call.1
= control target key start
LH: loop header
LB: loop body
LE: loop exit
PB: predicated region body
PF: predicated region fallthrough
CT: control target
= control target key end

     0   :  { %9 = vsyncpa [#allocation5], 0  ;;  %s4083_s0 = inlined_call_operand.hbm [shape: f32[8,4,8,32], index: 0, kind: input, shape index: {}]   ;;  %s4084_s1 = inlined_call_operand.hbm [shape: f32[4,32,32], index: 1, kind: input, shape index: {}]   ;;  %s4085_s2 = inlined_call_operand.vmem [shape: f32[32,8], index: 2, kind: input, shape index: {}]   ;;  %s4086_s3 = inlined_call_operand.vmem [shape: f32[1,8], index: 3, kind: input, shape index: {}]   ;;  %s4087_s4 = inlined_call_operand.hbm [shape: f32[8,8], index: 4, kind: output, shape index: {}]  }
   0x1   :  { %10 = vsyncpa [#allocation8], 0 }
   0x2   :  { %11 = vsyncpa [#allocation6], 0  ;;  %s3717_s15 = smov [#allocation4]   ;;  %s3645_s19 = scalar_lea.hbm %s4083_s0, 4096 }
   0x3   :  { %s17_s16 = sshll.u32 %s3717_s15, 4  ;;  %p3646_p0 = scmp.ne.s32.totalorder %s4083_s0, %s3645_s19  ;;  %s18_s16 = int_to_ptr.vmem [resolvable:$true] %s17_s16 }
   0x4   :  { %p3649_p1 = scmp.lt.u32.totalorder %s3645_s19, %s4083_s0 }
   0x6   :  { %p3651_p2 = pnand %p3649_p1, %p3646_p0 }
   0x8   :  { %3654 = shalt.err (!%p3651_p2)
}
   0x9   :  { %s3655_s24 = scalar_lea.vmem %s18_s16, 4096  ;;  %p3660_p4 = scmp.lt.s32.totalorder %s18_s16, %s18_s16 }
   0xa   :  { %p3656_p3 = scmp.ne.s32.totalorder %s18_s16, %s3655_s24  ;;  %p3661_p5 = scmp.lt.s32.totalorder %s3655_s24, %s3655_s24 }
   0xc   :  { %p3662_p6 = por %p3661_p5, %p3660_p4 }
   0xe   :  { %p3663_p7 = pnand %p3662_p6, %p3656_p3 }
  0x10   :  { %3666 = shalt.err (!%p3663_p7)
}
  0x11   :  { %s3718_s25 = smov 128   ;;  %s3719_s26 = smov 8  }
  0x12   :  { %23 = dma.hbm_to_vmem [thread:$0]  %s4083_s0, 4096, %s18_s16, [#allocation5], %s3718_s25, %s3718_s25, %s3719_s26  }
  0x13   :  { %s3720_s29 = smov [#allocation7]   ;;  %s3667_s7 = scalar_lea.hbm %s4084_s1, 2048 }
  0x14   :  { %s29_s30 = sshll.u32 %s3720_s29, 4  ;;  %p3668_p8 = scmp.ne.s32.totalorder %s4084_s1, %s3667_s7  ;;  %s30_s30 = int_to_ptr.vmem [resolvable:$true] %s29_s30 }
  0x15   :  { %p3671_p9 = scmp.lt.u32.totalorder %s3667_s7, %s4084_s1 }
  0x17   :  { %p3673_p10 = pnand %p3671_p9, %p3668_p8 }
  0x19   :  { %3676 = shalt.err (!%p3673_p10)
}
  0x1a   :  { %s3677_s12 = scalar_lea.vmem %s30_s30, 2048  ;;  %p3682_p12 = scmp.lt.s32.totalorder %s30_s30, %s30_s30 }
  0x1b   :  { %p3678_p11 = scmp.ne.s32.totalorder %s30_s30, %s3677_s12  ;;  %p3683_p13 = scmp.lt.s32.totalorder %s3677_s12, %s3677_s12 }
  0x1d   :  { %p3684_p0 = por %p3683_p13, %p3682_p12 }
  0x1f   :  { %p3685_p1 = pnand %p3684_p0, %p3678_p11 }
  0x21   :  { %3688 = shalt.err (!%p3685_p1)
}
  0x22   :  { %35 = dma.hbm_to_vmem [thread:$0]  %s4084_s1, 2048, %s30_s30, [#allocation8], %s3718_s25, %s3718_s25, %s3719_s26  }
  0x23   :  { %3711 = dma.done.wait [#allocation5], 4096  }
  0x24   :  { %3712 = vsyncadd [#allocation5], 4294963200 }
  0x25   :  { %3713 = dma.done.wait [#allocation8], 2048  }
  0x26   :  { %3714 = vsyncadd [#allocation8], 4294965248  ;;  %vm50_vm0 = vcmask 261120   ;;  %v3721_v0 = vmov 0.0|0.0   ;;  %v3722_v1 = vmov 0.0   ;;  %vm3723_vm1 = vmmov 0  }
  0x27   :  { %3307 = vmatprep.subr.bf16.mxu0 %v3721_v0  ;;  %3313 = vmatprep.subr.bf16.mxu1 %v3721_v0  ;;  %51 = vst.msk [vmem:[#allocation2] sm:$0xff] %vm50_vm0, %v3722_v1  ;;  %52 = vst.msk [vmem:[#allocation3] sm:$0xff] %vm50_vm0, %v3722_v1  ;;  %v53_v2 = vld [vmem:[#allocation7] sm:$0xff]  ;;  %v54_v3 = vld [vmem:[#allocation7 + $0x8] sm:$0xff]  ;;  %vm2691_vm2 = vcmask 64512   ;;  %s3724_s22 = smov [#allocation9]  }
  0x28   :  { %2952 = vmatprep.mubr.msk.f32.mxu0 %vm3723_vm1, %v3722_v1  ;;  %2963 = vmatprep.mubr.msk.f32.mxu1 %vm3723_vm1, %v3722_v1  ;;  %v58_v4 = vld [vmem:[#allocation7 + $0x20] sm:$0xff]  ;;  %v3784_v5 = vpack.c.bf16 %v54_v3, %v53_v2  ;;  %v59_v6 = vld [vmem:[#allocation7 + $0x28] sm:$0xff]  ;;  %v55_v7 = vld [vmem:[#allocation7 + $0x10] sm:$0xff] }
  0x29   :  { %v56_v8 = vld [vmem:[#allocation7 + $0x18] sm:$0xff]  ;;  %v3786_v9 = vpack.c.bf16 %v59_v6, %v58_v4  ;;  %v60_v10 = vld [vmem:[#allocation7 + $0x30] sm:$0xff]  ;;  %v63_v14 = vld [vmem:[#allocation7 + $0x40] sm:$0xff] }
  0x2a   :  { %v61_v11 = vld [vmem:[#allocation7 + $0x38] sm:$0xff]  ;;  %3309 = vmatpush3.bf16.msra.mxu0 %v3784_v5  ;;  %v3789_v12 = vpack.c.bf16 %v56_v8, %v55_v7  ;;  %v64_v15 = vld [vmem:[#allocation7 + $0x48] sm:$0xff]  ;;  %v68_v16 = vld [vmem:[#allocation7 + $0x60] sm:$0xff] }
  0x2b   :  { %3315 = vmatpush3.bf16.msra.mxu1 %v3786_v9  ;;  %3310 = vmatprep.subr.bf16.mxu0 %v3721_v0  ;;  %v3793_v13 = vpack.c.bf16 %v61_v11, %v60_v10  ;;  %v69_v17 = vld [vmem:[#allocation7 + $0x68] sm:$0xff]  ;;  %v3797_v19 = vpack.c.bf16 %v64_v15, %v63_v14  ;;  %v65_v21 = vld [vmem:[#allocation7 + $0x50] sm:$0xff]  ;;  %v66_v22 = vld [vmem:[#allocation7 + $0x58] sm:$0xff] }
  0x2c   :  { %3316 = vmatprep.subr.bf16.mxu1 %v3721_v0  ;;  %v3801_v20 = vpack.c.bf16 %v69_v17, %v68_v16  ;;  %v70_v23 = vld [vmem:[#allocation7 + $0x70] sm:$0xff]  ;;  %v71_v24 = vld [vmem:[#allocation7 + $0x78] sm:$0xff]  ;;  %v3807_v25 = vpack.c.bf16 %v66_v22, %v65_v21  ;;  %v74_v27 = vld [vmem:[#allocation4] sm:$0xff] }
  0x2d   :  { %v3811_v26 = vpack.c.bf16 %v71_v24, %v70_v23  ;;  %v75_v28 = vld [vmem:[#allocation4 + $0x8] sm:$0xff]  ;;  %v77_v37 = vld [vmem:[#allocation4 + $0x18] sm:$0xff]  ;;  %v76_v39 = vld [vmem:[#allocation4 + $0x10] sm:$0xff] }
  0x2e   :  { %3312 = vmatpush3.bf16.msra.mxu0 %v3789_v12  ;;  %v72_v18 = vld [vmem:[#allocation2] sm:$0xff]  ;;  %v73_v52 = vld [vmem:[#allocation3] sm:$0xff]  ;;  %v391_v62 = vld [vmem:[#allocation4 + $0x20] sm:$0xff] }
  0x2f   :  { %3318 = vmatpush3.bf16.msra.mxu1 %v3793_v13  ;;  %3319 = vmatprep.subr.bf16.mxu0 %v3721_v0  ;;  %v392_v63 = vld [vmem:[#allocation4 + $0x28] sm:$0xff]  ;;  %v394_v14 = vld [vmem:[#allocation4 + $0x38] sm:$0xff]  ;;  %v393_v22 = vld [vmem:[#allocation4 + $0x30] sm:$0xff] }
  0x30   :  { %3325 = vmatprep.subr.bf16.mxu1 %v3721_v0 }
  0x31   :  { %2953 = vmatmul.mubr.msk.f32.vlgmr.msra.gmra.mrb[0].mxu0 %vm50_vm0, %v72_v18 }
  0x32   :  { %2964 = vmatmul.mubr.msk.f32.vlgmr.msra.gmra.mrb[0].mxu1 %vm50_vm0, %v72_v18  ;;  %3321 = vmatpush3.bf16.msra.mxu0 %v3797_v19 }
  0x33   :  { %3327 = vmatpush3.bf16.msra.mxu1 %v3801_v20  ;;  %3322 = vmatprep.subr.bf16.mxu0 %v3721_v0 }
  0x34   :  { %3328 = vmatprep.subr.bf16.mxu1 %v3721_v0  ;;  %2974 = vmatprep.mubr.msk.f32.mxu0 %vm3723_vm1, %v3722_v1 }
  0x35   :  { %2985 = vmatprep.mubr.msk.f32.mxu1 %vm3723_vm1, %v3722_v1 }
  0x36   :  { %3324 = vmatpush3.bf16.msra.mxu0 %v3807_v25 }
  0x37   :  { %3330 = vmatpush3.bf16.msra.mxu1 %v3811_v26  ;;  %3331 = vmatprep.subr.bf16.mxu0 %v3721_v0 }
  0x38   :  { %3337 = vmatprep.subr.bf16.mxu1 %v3721_v0 }
  0x39   :  { %2975 = vmatmul.mubr.msk.f32.vlgmr.msra.gmra.mrb[2].mxu0 %vm50_vm0, %v72_v18 }
  0x3a   :  { %2986 = vmatmul.mubr.msk.f32.vlgmr.msra.gmra.mrb[2].mxu1 %vm50_vm0, %v72_v18  ;;  %3333 = vmatpush3.bf16.msra.mxu0 %v3784_v5 }
  0x3b   :  { %3339 = vmatpush3.bf16.msra.mxu1 %v3786_v9  ;;  %3334 = vmatprep.subr.bf16.mxu0 %v3721_v0 }
  0x3c   :  { %3340 = vmatprep.subr.bf16.mxu1 %v3721_v0  ;;  %2996 = vmatprep.mubr.msk.f32.mxu0 %vm3723_vm1, %v3722_v1 }
  0x3d   :  { %3007 = vmatprep.mubr.msk.f32.mxu1 %vm3723_vm1, %v3722_v1 }
  0x3e   :  { %3336 = vmatpush3.bf16.msra.mxu0 %v3789_v12 }
  0x3f   :  { %3342 = vmatpush3.bf16.msra.mxu1 %v3793_v13  ;;  %3343 = vmatprep.subr.bf16.mxu0 %v3721_v0 }
  0x40   :  { %3349 = vmatprep.subr.bf16.mxu1 %v3721_v0 }
 0x104   :  { %v148_v29 = vpop.f32.mrb[0].mxu0 }
 0x105   :  { %v152_v30 = vadd.f32 %v148_v29, %v74_v27  ;;  %v219_v31 = vpop.f32.mrb[0].mxu1  ;;  %v2954_v32 = vpop.f32.mrb[1].mxu0 }
 0x106   :  { %v223_v33 = vadd.f32 %v219_v31, %v75_v28  ;;  %v2965_v34 = vpop.f32.mrb[1].mxu1 }
 0x107   :  { %v2725_v35 = vmul.f32 -1.442695, %v152_v30 }
 0x108   :  { %v2726_v36 = vmul.f32 -1.442695, %v223_v33 }
 0x109   :  { %3513 = vpow2.f32 %v2725_v35 }
 0x10a   :  { %3515 = vpow2.f32 %v2726_v36 }
 0x10c   :  { %v290_v38 = vpop.f32.mrb[2].mxu0 }
 0x10d   :  { %v361_v40 = vpop.f32.mrb[2].mxu1  ;;  %v2976_v41 = vpop.f32.mrb[3].mxu0  ;;  %v294_v44 = vadd.f32 %v290_v38, %v76_v39 }
 0x10e   :  { %v365_v42 = vadd.f32 %v361_v40, %v77_v37  ;;  %v2987_v43 = vpop.f32.mrb[3].mxu1 }
 0x10f   :  { %v708_v43 = vld [vmem:[#allocation4 + $0x48] sm:$0xff] }
 0x110   :  { %v2727_v45 = vmul.f32 -1.442695, %v365_v42  ;;  %v707_v42 = vld [vmem:[#allocation4 + $0x40] sm:$0xff] }
 0x112   :  { %3517 = vpow2.f32 %v2727_v45 }
 0x113   :  { %v3514_v46 = vpop.eup %3513  ;;  %3519 = vtanh.f32 %v294_v44 }
 0x114   :  { %v3516_v47 = vpop.eup %3515  ;;  %v369_v48 = vadd.f32 1.0, %v3514_v46 }
 0x115   :  { %v375_v49 = vadd.f32 1.0, %v3516_v47 }
 0x116   :  { %3521 = vrcp.f32 %v369_v48 }
 0x117   :  { %3523 = vrcp.f32 %v375_v49 }
 0x11c   :  { %v3518_v50 = vpop.eup %3517 }
 0x11d   :  { %v3520_v51 = vpop.eup %3519  ;;  %v382_v54 = vadd.f32 1.0, %v3518_v50 }
 0x11f   :  { %3525 = vrcp.f32 %v382_v54 }
 0x120   :  { %v3522_v53 = vpop.eup %3521 }
 0x121   :  { %v3524_v55 = vpop.eup %3523  ;;  %v386_v56 = vmul.f32 %v3522_v53, %v3520_v51 }
 0x122   :  { %v385_v57 = vmul.f32 %v3524_v55, %v73_v52  ;;  %v710_v52 = vld [vmem:[#allocation4 + $0x58] sm:$0xff] }
 0x124   :  { %v3836_v58 = vadd.f32 %v386_v56, %v385_v57 }
 0x126   :  { %3527 = vtanh.f32 %v3836_v58 }
 0x129   :  { %v3526_v59 = vpop.eup %3525 }
 0x130   :  { %v3528_v60 = vpop.eup %3527 }
 0x131   :  { %v389_v61 = vmul.f32 %v3528_v60, %v3526_v59 }
 0x133   :  { %2997 = vmatmul.mubr.msk.f32.vlgmr.msra.gmra.mrb[4].mxu0 %vm50_vm0, %v389_v61  ;;  %3008 = vmatmul.mubr.msk.f32.vlgmr.msra.gmra.mrb[4].mxu1 %vm50_vm0, %v389_v61 }
 0x134   :  { %3345 = vmatpush3.bf16.msra.mxu0 %v3797_v19  ;;  %3351 = vmatpush3.bf16.msra.mxu1 %v3801_v20 }
 0x135   :  { %3346 = vmatprep.subr.bf16.mxu0 %v3721_v0  ;;  %3352 = vmatprep.subr.bf16.mxu1 %v3721_v0 }
 0x136   :  { %3018 = vmatprep.mubr.msk.f32.mxu0 %vm3723_vm1, %v3722_v1  ;;  %3029 = vmatprep.mubr.msk.f32.mxu1 %vm3723_vm1, %v3722_v1 }
 0x138   :  { %3348 = vmatpush3.bf16.msra.mxu0 %v3807_v25  ;;  %3354 = vmatpush3.bf16.msra.mxu1 %v3811_v26 }
 0x139   :  { %3355 = vmatprep.subr.bf16.mxu0 %v3721_v0  ;;  %3361 = vmatprep.subr.bf16.mxu1 %v3721_v0 }
 0x13b   :  { %3019 = vmatmul.mubr.msk.f32.vlgmr.msra.gmra.mrb[6].mxu0 %vm50_vm0, %v389_v61  ;;  %3030 = vmatmul.mubr.msk.f32.vlgmr.msra.gmra.mrb[6].mxu1 %vm50_vm0, %v389_v61 }
 0x13c   :  { %3357 = vmatpush3.bf16.msra.mxu0 %v3784_v5  ;;  %3363 = vmatpush3.bf16.msra.mxu1 %v3786_v9 }
 0x13d   :  { %3358 = vmatprep.subr.bf16.mxu0 %v3721_v0  ;;  %3364 = vmatprep.subr.bf16.mxu1 %v3721_v0 }
 0x13e   :  { %3040 = vmatprep.mubr.msk.f32.mxu0 %vm3723_vm1, %v3722_v1  ;;  %3051 = vmatprep.mubr.msk.f32.mxu1 %vm3723_vm1, %v3722_v1 }
 0x140   :  { %3360 = vmatpush3.bf16.msra.mxu0 %v3789_v12  ;;  %3366 = vmatpush3.bf16.msra.mxu1 %v3793_v13 }
 0x141   :  { %3367 = vmatprep.subr.bf16.mxu0 %v3721_v0  ;;  %3373 = vmatprep.subr.bf16.mxu1 %v3721_v0 }
 0x206   :  { %v464_v2 = vpop.f32.mrb[4].mxu0  ;;  %v535_v3 = vpop.f32.mrb[4].mxu1 }
 0x207   :  { %v468_v4 = vadd.f32 %v464_v2, %v391_v62  ;;  %v539_v6 = vadd.f32 %v535_v3, %v392_v63  ;;  %v2998_v7 = vpop.f32.mrb[5].mxu0  ;;  %v3009_v8 = vpop.f32.mrb[5].mxu1 }
 0x209   :  { %v2732_v10 = vmul.f32 -1.442695, %v468_v4  ;;  %v2733_v11 = vmul.f32 -1.442695, %v539_v6 }
 0x20b   :  { %3529 = vpow2.f32 %v2732_v10 }
 0x20c   :  { %3531 = vpow2.f32 %v2733_v11 }
 0x20e   :  { %v606_v15 = vpop.f32.mrb[6].mxu0  ;;  %v677_v16 = vpop.f32.mrb[6].mxu1 }
 0x20f   :  { %v681_v17 = vadd.f32 %v677_v16, %v394_v14  ;;  %v3020_v18 = vpop.f32.mrb[7].mxu0  ;;  %v3031_v21 = vpop.f32.mrb[7].mxu1  ;;  %v610_v24 = vadd.f32 %v606_v15, %v393_v22 }
 0x210   :  { %v1023_v18 = vld [vmem:[#allocation4 + $0x60] sm:$0xff]  ;;  %v1024_v21 = vld [vmem:[#allocation4 + $0x68] sm:$0xff] }
 0x211   :  { %v2734_v23 = vmul.f32 -1.442695, %v681_v17 }
 0x213   :  { %3533 = vpow2.f32 %v2734_v23 }
 0x214   :  { %3535 = vtanh.f32 %v610_v24 }
 0x215   :  { %v3530_v27 = vpop.eup %3529 }
 0x216   :  { %v3532_v28 = vpop.eup %3531  ;;  %v685_v29 = vadd.f32 1.0, %v3530_v27 }
 0x217   :  { %v691_v30 = vadd.f32 1.0, %v3532_v28 }
 0x218   :  { %3537 = vrcp.f32 %v685_v29 }
 0x219   :  { %3539 = vrcp.f32 %v691_v30 }
 0x21d   :  { %v3534_v31 = vpop.eup %3533 }
 0x21e   :  { %v3536_v32 = vpop.eup %3535  ;;  %v698_v36 = vadd.f32 1.0, %v3534_v31 }
 0x220   :  { %3541 = vrcp.f32 %v698_v36 }
 0x222   :  { %v3538_v33 = vpop.eup %3537 }
 0x223   :  { %v3540_v34 = vpop.eup %3539  ;;  %v702_v35 = vmul.f32 %v3538_v33, %v3536_v32  ;;  %v1026_v32 = vld [vmem:[#allocation4 + $0x78] sm:$0xff] }
 0x224   :  { %v701_v37 = vmul.f32 %v3540_v34, %v3836_v58  ;;  %v709_v58 = vld [vmem:[#allocation4 + $0x50] sm:$0xff] }
 0x226   :  { %v3868_v38 = vadd.f32 %v702_v35, %v701_v37 }
 0x228   :  { %3543 = vtanh.f32 %v3868_v38 }
 0x22a   :  { %v3542_v39 = vpop.eup %3541 }
 0x232   :  { %v3544_v40 = vpop.eup %3543 }
 0x233   :  { %v705_v41 = vmul.f32 %v3544_v40, %v3542_v39 }
 0x235   :  { %3041 = vmatmul.mubr.msk.f32.vlgmr.msra.gmra.mrb[8].mxu0 %vm50_vm0, %v705_v41  ;;  %3052 = vmatmul.mubr.msk.f32.vlgmr.msra.gmra.mrb[8].mxu1 %vm50_vm0, %v705_v41 }
 0x236   :  { %3369 = vmatpush3.bf16.msra.mxu0 %v3797_v19  ;;  %3375 = vmatpush3.bf16.msra.mxu1 %v3801_v20 }
 0x237   :  { %3370 = vmatprep.subr.bf16.mxu0 %v3721_v0  ;;  %3376 = vmatprep.subr.bf16.mxu1 %v3721_v0 }
 0x238   :  { %3062 = vmatprep.mubr.msk.f32.mxu0 %vm3723_vm1, %v3722_v1  ;;  %3073 = vmatprep.mubr.msk.f32.mxu1 %vm3723_vm1, %v3722_v1 }
 0x23a   :  { %3372 = vmatpush3.bf16.msra.mxu0 %v3807_v25  ;;  %3378 = vmatpush3.bf16.msra.mxu1 %v3811_v26 }
 0x23b   :  { %3379 = vmatprep.subr.bf16.mxu0 %v3721_v0  ;;  %3385 = vmatprep.subr.bf16.mxu1 %v3721_v0 }
 0x23d   :  { %3063 = vmatmul.mubr.msk.f32.vlgmr.msra.gmra.mrb[10].mxu0 %vm50_vm0, %v705_v41  ;;  %3074 = vmatmul.mubr.msk.f32.vlgmr.msra.gmra.mrb[10].mxu1 %vm50_vm0, %v705_v41 }
 0x23e   :  { %3381 = vmatpush3.bf16.msra.mxu0 %v3784_v5  ;;  %3387 = vmatpush3.bf16.msra.mxu1 %v3786_v9 }
 0x23f   :  { %3382 = vmatprep.subr.bf16.mxu0 %v3721_v0  ;;  %3388 = vmatprep.subr.bf16.mxu1 %v3721_v0 }
 0x240   :  { %3084 = vmatprep.mubr.msk.f32.mxu0 %vm3723_vm1, %v3722_v1  ;;  %3095 = vmatprep.mubr.msk.f32.mxu1 %vm3723_vm1, %v3722_v1 }
 0x242   :  { %3384 = vmatpush3.bf16.msra.mxu0 %v3789_v12  ;;  %3390 = vmatpush3.bf16.msra.mxu1 %v3793_v13 }
 0x243   :  { %3391 = vmatprep.subr.bf16.mxu0 %v3721_v0  ;;  %3397 = vmatprep.subr.bf16.mxu1 %v3721_v0 }
 0x308   :  { %v780_v44 = vpop.f32.mrb[8].mxu0  ;;  %v851_v45 = vpop.f32.mrb[8].mxu1 }
 0x309   :  { %v784_v46 = vadd.f32 %v780_v44, %v707_v42  ;;  %v855_v47 = vadd.f32 %v851_v45, %v708_v43  ;;  %v3042_v48 = vpop.f32.mrb[9].mxu0  ;;  %v3053_v49 = vpop.f32.mrb[9].mxu1 }
 0x30b   :  { %v2739_v50 = vmul.f32 -1.442695, %v784_v46  ;;  %v2740_v51 = vmul.f32 -1.442695, %v855_v47 }
 0x30d   :  { %3545 = vpow2.f32 %v2739_v50 }
 0x30e   :  { %3547 = vpow2.f32 %v2740_v51 }
 0x310   :  { %v922_v53 = vpop.f32.mrb[10].mxu0  ;;  %v993_v54 = vpop.f32.mrb[10].mxu1 }
 0x311   :  { %v997_v55 = vadd.f32 %v993_v54, %v710_v52  ;;  %v3064_v56 = vpop.f32.mrb[11].mxu0  ;;  %v3075_v57 = vpop.f32.mrb[11].mxu1  ;;  %v926_v60 = vadd.f32 %v922_v53, %v709_v58 }
 0x312   :  { %v1339_v56 = vld [vmem:[#allocation4 + $0x80] sm:$0xff]  ;;  %v1340_v57 = vld [vmem:[#allocation4 + $0x88] sm:$0xff] }
 0x313   :  { %v2741_v59 = vmul.f32 -1.442695, %v997_v55 }
 0x315   :  { %3549 = vpow2.f32 %v2741_v59 }
 0x316   :  { %3551 = vtanh.f32 %v926_v60 }
 0x317   :  { %v3546_v61 = vpop.eup %3545 }
 0x318   :  { %v3548_v62 = vpop.eup %3547  ;;  %v1001_v63 = vadd.f32 1.0, %v3546_v61 }
 0x319   :  { %v1007_v2 = vadd.f32 1.0, %v3548_v62 }
 0x31a   :  { %3553 = vrcp.f32 %v1001_v63 }
 0x31b   :  { %3555 = vrcp.f32 %v1007_v2 }
 0x31f   :  { %v3550_v3 = vpop.eup %3549 }
 0x320   :  { %v3552_v4 = vpop.eup %3551  ;;  %v1014_v10 = vadd.f32 1.0, %v3550_v3 }
 0x322   :  { %3557 = vrcp.f32 %v1014_v10 }
 0x324   :  { %v3554_v6 = vpop.eup %3553 }
 0x325   :  { %v3556_v7 = vpop.eup %3555  ;;  %v1018_v8 = vmul.f32 %v3554_v6, %v3552_v4  ;;  %v1342_v4 = vld [vmem:[#allocation4 + $0x98] sm:$0xff] }
 0x326   :  { %v1017_v11 = vmul.f32 %v3556_v7, %v3868_v38  ;;  %v1025_v38 = vld [vmem:[#allocation4 + $0x70] sm:$0xff] }
 0x328   :  { %v3900_v14 = vadd.f32 %v1018_v8, %v1017_v11 }
 0x32a   :  { %3559 = vtanh.f32 %v3900_v14 }
 0x32c   :  { %v3558_v15 = vpop.eup %3557 }
 0x334   :  { %v3560_v16 = vpop.eup %3559 }
 0x335   :  { %v1021_v17 = vmul.f32 %v3560_v16, %v3558_v15 }
 0x337   :  { %3085 = vmatmul.mubr.msk.f32.vlgmr.msra.gmra.mrb[12].mxu0 %vm50_vm0, %v1021_v17  ;;  %3096 = vmatmul.mubr.msk.f32.vlgmr.msra.gmra.mrb[12].mxu1 %vm50_vm0, %v1021_v17 }
 0x338   :  { %3393 = vmatpush3.bf16.msra.mxu0 %v3797_v19  ;;  %3399 = vmatpush3.bf16.msra.mxu1 %v3801_v20 }
 0x339   :  { %3394 = vmatprep.subr.bf16.mxu0 %v3721_v0  ;;  %3400 = vmatprep.subr.bf16.mxu1 %v3721_v0 }
 0x33a   :  { %3106 = vmatprep.mubr.msk.f32.mxu0 %vm3723_vm1, %v3722_v1  ;;  %3117 = vmatprep.mubr.msk.f32.mxu1 %vm3723_vm1, %v3722_v1 }
 0x33c   :  { %3396 = vmatpush3.bf16.msra.mxu0 %v3807_v25  ;;  %3402 = vmatpush3.bf16.msra.mxu1 %v3811_v26 }
 0x33d   :  { %3403 = vmatprep.subr.bf16.mxu0 %v3721_v0  ;;  %3409 = vmatprep.subr.bf16.mxu1 %v3721_v0 }
 0x33f   :  { %3107 = vmatmul.mubr.msk.f32.vlgmr.msra.gmra.mrb[14].mxu0 %vm50_vm0, %v1021_v17  ;;  %3118 = vmatmul.mubr.msk.f32.vlgmr.msra.gmra.mrb[14].mxu1 %vm50_vm0, %v1021_v17 }
 0x340   :  { %3405 = vmatpush3.bf16.msra.mxu0 %v3784_v5  ;;  %3411 = vmatpush3.bf16.msra.mxu1 %v3786_v9 }
 0x341   :  { %3406 = vmatprep.subr.bf16.mxu0 %v3721_v0  ;;  %3412 = vmatprep.subr.bf16.mxu1 %v3721_v0 }
 0x342   :  { %3128 = vmatprep.mubr.msk.f32.mxu0 %vm3723_vm1, %v3722_v1  ;;  %3139 = vmatprep.mubr.msk.f32.mxu1 %vm3723_vm1, %v3722_v1 }
 0x344   :  { %3408 = vmatpush3.bf16.msra.mxu0 %v3789_v12  ;;  %3414 = vmatpush3.bf16.msra.mxu1 %v3793_v13 }
 0x345   :  { %3415 = vmatprep.subr.bf16.mxu0 %v3721_v0  ;;  %3421 = vmatprep.subr.bf16.mxu1 %v3721_v0 }
 0x40a   :  { %v1096_v22 = vpop.f32.mrb[12].mxu0  ;;  %v1167_v23 = vpop.f32.mrb[12].mxu1 }
 0x40b   :  { %v1100_v24 = vadd.f32 %v1096_v22, %v1023_v18  ;;  %v1171_v27 = vadd.f32 %v1167_v23, %v1024_v21  ;;  %v3086_v28 = vpop.f32.mrb[13].mxu0  ;;  %v3097_v29 = vpop.f32.mrb[13].mxu1 }
 0x40d   :  { %v2746_v30 = vmul.f32 -1.442695, %v1100_v24  ;;  %v2747_v31 = vmul.f32 -1.442695, %v1171_v27 }
 0x40f   :  { %3561 = vpow2.f32 %v2746_v30 }
 0x410   :  { %3563 = vpow2.f32 %v2747_v31 }
 0x412   :  { %v1238_v33 = vpop.f32.mrb[14].mxu0  ;;  %v1309_v34 = vpop.f32.mrb[14].mxu1 }
 0x413   :  { %v1313_v35 = vadd.f32 %v1309_v34, %v1026_v32  ;;  %v3108_v36 = vpop.f32.mrb[15].mxu0  ;;  %v3119_v37 = vpop.f32.mrb[15].mxu1  ;;  %v1242_v40 = vadd.f32 %v1238_v33, %v1025_v38 }
 0x414   :  { %v1655_v36 = vld [vmem:[#allocation4 + $0xa0] sm:$0xff]  ;;  %v1656_v37 = vld [vmem:[#allocation4 + $0xa8] sm:$0xff] }
 0x415   :  { %v2748_v39 = vmul.f32 -1.442695, %v1313_v35 }
 0x417   :  { %3565 = vpow2.f32 %v2748_v39 }
 0x418   :  { %3567 = vtanh.f32 %v1242_v40 }
 0x419   :  { %v3562_v41 = vpop.eup %3561 }
 0x41a   :  { %v3564_v42 = vpop.eup %3563  ;;  %v1317_v43 = vadd.f32 1.0, %v3562_v41 }
 0x41b   :  { %v1323_v44 = vadd.f32 1.0, %v3564_v42 }
 0x41c   :  { %3569 = vrcp.f32 %v1317_v43 }
 0x41d   :  { %3571 = vrcp.f32 %v1323_v44 }
 0x421   :  { %v3566_v45 = vpop.eup %3565 }
 0x422   :  { %v3568_v46 = vpop.eup %3567  ;;  %v1330_v50 = vadd.f32 1.0, %v3566_v45 }
 0x424   :  { %3573 = vrcp.f32 %v1330_v50 }
 0x426   :  { %v3570_v47 = vpop.eup %3569 }
 0x427   :  { %v3572_v48 = vpop.eup %3571  ;;  %v1334_v49 = vmul.f32 %v3570_v47, %v3568_v46  ;;  %v1658_v46 = vld [vmem:[#allocation4 + $0xb8] sm:$0xff] }
 0x428   :  { %v1333_v51 = vmul.f32 %v3572_v48, %v3900_v14  ;;  %v1341_v14 = vld [vmem:[#allocation4 + $0x90] sm:$0xff] }
 0x42a   :  { %v3932_v52 = vadd.f32 %v1334_v49, %v1333_v51 }
 0x42c   :  { %3575 = vtanh.f32 %v3932_v52 }
 0x42e   :  { %v3574_v53 = vpop.eup %3573 }
 0x436   :  { %v3576_v54 = vpop.eup %3575 }
 0x437   :  { %v1337_v55 = vmul.f32 %v3576_v54, %v3574_v53 }
 0x439   :  { %3129 = vmatmul.mubr.msk.f32.vlgmr.msra.gmra.mrb[16].mxu0 %vm50_vm0, %v1337_v55  ;;  %3140 = vmatmul.mubr.msk.f32.vlgmr.msra.gmra.mrb[16].mxu1 %vm50_vm0, %v1337_v55 }
 0x43a   :  { %3417 = vmatpush3.bf16.msra.mxu0 %v3797_v19  ;;  %3423 = vmatpush3.bf16.msra.mxu1 %v3801_v20 }
 0x43b   :  { %3418 = vmatprep.subr.bf16.mxu0 %v3721_v0  ;;  %3424 = vmatprep.subr.bf16.mxu1 %v3721_v0 }
 0x43c   :  { %3150 = vmatprep.mubr.msk.f32.mxu0 %vm3723_vm1, %v3722_v1  ;;  %3161 = vmatprep.mubr.msk.f32.mxu1 %vm3723_vm1, %v3722_v1 }
 0x43e   :  { %3420 = vmatpush3.bf16.msra.mxu0 %v3807_v25  ;;  %3426 = vmatpush3.bf16.msra.mxu1 %v3811_v26 }
 0x43f   :  { %3427 = vmatprep.subr.bf16.mxu0 %v3721_v0  ;;  %3433 = vmatprep.subr.bf16.mxu1 %v3721_v0 }
 0x441   :  { %3151 = vmatmul.mubr.msk.f32.vlgmr.msra.gmra.mrb[18].mxu0 %vm50_vm0, %v1337_v55  ;;  %3162 = vmatmul.mubr.msk.f32.vlgmr.msra.gmra.mrb[18].mxu1 %vm50_vm0, %v1337_v55 }
 0x442   :  { %3429 = vmatpush3.bf16.msra.mxu0 %v3784_v5  ;;  %3435 = vmatpush3.bf16.msra.mxu1 %v3786_v9 }
 0x443   :  { %3430 = vmatprep.subr.bf16.mxu0 %v3721_v0  ;;  %3436 = vmatprep.subr.bf16.mxu1 %v3721_v0 }
 0x444   :  { %3172 = vmatprep.mubr.msk.f32.mxu0 %vm3723_vm1, %v3722_v1  ;;  %3183 = vmatprep.mubr.msk.f32.mxu1 %vm3723_vm1, %v3722_v1 }
 0x446   :  { %3432 = vmatpush3.bf16.msra.mxu0 %v3789_v12  ;;  %3438 = vmatpush3.bf16.msra.mxu1 %v3793_v13 }
 0x447   :  { %3439 = vmatprep.subr.bf16.mxu0 %v3721_v0  ;;  %3445 = vmatprep.subr.bf16.mxu1 %v3721_v0 }
 0x50c   :  { %v1412_v58 = vpop.f32.mrb[16].mxu0  ;;  %v1483_v59 = vpop.f32.mrb[16].mxu1 }
 0x50d   :  { %v1416_v60 = vadd.f32 %v1412_v58, %v1339_v56  ;;  %v1487_v61 = vadd.f32 %v1483_v59, %v1340_v57  ;;  %v3130_v62 = vpop.f32.mrb[17].mxu0  ;;  %v3141_v63 = vpop.f32.mrb[17].mxu1 }
 0x50f   :  { %v2753_v2 = vmul.f32 -1.442695, %v1416_v60  ;;  %v2754_v3 = vmul.f32 -1.442695, %v1487_v61 }
 0x511   :  { %3577 = vpow2.f32 %v2753_v2 }
 0x512   :  { %3579 = vpow2.f32 %v2754_v3 }
 0x514   :  { %v1554_v6 = vpop.f32.mrb[18].mxu0  ;;  %v1625_v7 = vpop.f32.mrb[18].mxu1 }
 0x515   :  { %v1629_v8 = vadd.f32 %v1625_v7, %v1342_v4  ;;  %v3152_v10 = vpop.f32.mrb[19].mxu0  ;;  %v3163_v11 = vpop.f32.mrb[19].mxu1  ;;  %v1558_v16 = vadd.f32 %v1554_v6, %v1341_v14 }
 0x517   :  { %v2755_v15 = vmul.f32 -1.442695, %v1629_v8 }
 0x519   :  { %3581 = vpow2.f32 %v2755_v15 }
 0x51a   :  { %3583 = vtanh.f32 %v1558_v16 }
 0x51b   :  { %v3578_v17 = vpop.eup %3577 }
 0x51c   :  { %v3580_v18 = vpop.eup %3579  ;;  %v1633_v21 = vadd.f32 1.0, %v3578_v17 }
 0x51d   :  { %v1639_v22 = vadd.f32 1.0, %v3580_v18 }
 0x51e   :  { %3585 = vrcp.f32 %v1633_v21 }
 0x51f   :  { %3587 = vrcp.f32 %v1639_v22  ;;  %v1974_v22 = vld [vmem:[#allocation4 + $0xd8] sm:$0xff] }
 0x523   :  { %v3582_v23 = vpop.eup %3581 }
 0x524   :  { %v3584_v24 = vpop.eup %3583  ;;  %v1646_v30 = vadd.f32 1.0, %v3582_v23 }
 0x526   :  { %3589 = vrcp.f32 %v1646_v30 }
 0x528   :  { %v3586_v27 = vpop.eup %3585 }
 0x529   :  { %v3588_v28 = vpop.eup %3587  ;;  %v1650_v29 = vmul.f32 %v3586_v27, %v3584_v24 }
 0x52a   :  { %v1649_v31 = vmul.f32 %v3588_v28, %v3932_v52  ;;  %v1657_v52 = vld [vmem:[#allocation4 + $0xb0] sm:$0xff] }
 0x52b   :  { %v1973_v28 = vld [vmem:[#allocation4 + $0xd0] sm:$0xff] }
 0x52c   :  { %v3964_v32 = vadd.f32 %v1650_v29, %v1649_v31 }
 0x52e   :  { %3591 = vtanh.f32 %v3964_v32 }
 0x530   :  { %v3590_v33 = vpop.eup %3589 }
 0x538   :  { %v3592_v34 = vpop.eup %3591 }
 0x539   :  { %v1653_v35 = vmul.f32 %v3592_v34, %v3590_v33 }
 0x53b   :  { %3173 = vmatmul.mubr.msk.f32.vlgmr.msra.gmra.mrb[20].mxu0 %vm50_vm0, %v1653_v35  ;;  %3184 = vmatmul.mubr.msk.f32.vlgmr.msra.gmra.mrb[20].mxu1 %vm50_vm0, %v1653_v35 }
 0x53c   :  { %3441 = vmatpush3.bf16.msra.mxu0 %v3797_v19  ;;  %3447 = vmatpush3.bf16.msra.mxu1 %v3801_v20 }
 0x53d   :  { %3442 = vmatprep.subr.bf16.mxu0 %v3721_v0  ;;  %3448 = vmatprep.subr.bf16.mxu1 %v3721_v0 }
 0x53e   :  { %3194 = vmatprep.mubr.msk.f32.mxu0 %vm3723_vm1, %v3722_v1  ;;  %3205 = vmatprep.mubr.msk.f32.mxu1 %vm3723_vm1, %v3722_v1 }
 0x540   :  { %3444 = vmatpush3.bf16.msra.mxu0 %v3807_v25  ;;  %3450 = vmatpush3.bf16.msra.mxu1 %v3811_v26 }
 0x541   :  { %3451 = vmatprep.subr.bf16.mxu0 %v3721_v0  ;;  %3457 = vmatprep.subr.bf16.mxu1 %v3721_v0 }
 0x543   :  { %3195 = vmatmul.mubr.msk.f32.vlgmr.msra.gmra.mrb[22].mxu0 %vm50_vm0, %v1653_v35  ;;  %3206 = vmatmul.mubr.msk.f32.vlgmr.msra.gmra.mrb[22].mxu1 %vm50_vm0, %v1653_v35 }
 0x544   :  { %3453 = vmatpush3.bf16.msra.mxu0 %v3784_v5  ;;  %3459 = vmatpush3.bf16.msra.mxu1 %v3786_v9 }
 0x545   :  { %3454 = vmatprep.subr.bf16.mxu0 %v3721_v0  ;;  %3460 = vmatprep.subr.bf16.mxu1 %v3721_v0 }
 0x546   :  { %3216 = vmatprep.mubr.msk.f32.mxu0 %vm3723_vm1, %v3722_v1  ;;  %3227 = vmatprep.mubr.msk.f32.mxu1 %vm3723_vm1, %v3722_v1 }
 0x548   :  { %3456 = vmatpush3.bf16.msra.mxu0 %v3789_v12  ;;  %3462 = vmatpush3.bf16.msra.mxu1 %v3793_v13 }
 0x549   :  { %3463 = vmatprep.subr.bf16.mxu0 %v3721_v0  ;;  %3469 = vmatprep.subr.bf16.mxu1 %v3721_v0 }
 0x60e   :  { %v1728_v38 = vpop.f32.mrb[20].mxu0  ;;  %v1799_v39 = vpop.f32.mrb[20].mxu1 }
 0x60f   :  { %v1732_v40 = vadd.f32 %v1728_v38, %v1655_v36  ;;  %v1803_v41 = vadd.f32 %v1799_v39, %v1656_v37  ;;  %v3174_v42 = vpop.f32.mrb[21].mxu0  ;;  %v3185_v43 = vpop.f32.mrb[21].mxu1 }
 0x611   :  { %v2760_v44 = vmul.f32 -1.442695, %v1732_v40  ;;  %v2761_v45 = vmul.f32 -1.442695, %v1803_v41 }
 0x613   :  { %3593 = vpow2.f32 %v2760_v44 }
 0x614   :  { %3595 = vpow2.f32 %v2761_v45 }
 0x616   :  { %v1870_v47 = vpop.f32.mrb[22].mxu0  ;;  %v1941_v48 = vpop.f32.mrb[22].mxu1 }
 0x617   :  { %v1945_v49 = vadd.f32 %v1941_v48, %v1658_v46  ;;  %v3196_v50 = vpop.f32.mrb[23].mxu0  ;;  %v3207_v51 = vpop.f32.mrb[23].mxu1  ;;  %v1874_v54 = vadd.f32 %v1870_v47, %v1657_v52  ;;  %v2610_v46 = vld [vmem:[%s4085_s2 + $0x18] sm:$0xff] }
 0x618   :  { %v2288_v48 = vld [vmem:[#allocation4 + $0xe8] sm:$0xff] }
 0x619   :  { %v2762_v53 = vmul.f32 -1.442695, %v1945_v49 }
 0x61b   :  { %3597 = vpow2.f32 %v2762_v53 }
 0x61c   :  { %3599 = vtanh.f32 %v1874_v54 }
 0x61d   :  { %v3594_v55 = vpop.eup %3593 }
 0x61e   :  { %v3596_v56 = vpop.eup %3595  ;;  %v1949_v57 = vadd.f32 1.0, %v3594_v55 }
 0x61f   :  { %v1955_v58 = vadd.f32 1.0, %v3596_v56 }
 0x620   :  { %3601 = vrcp.f32 %v1949_v57  ;;  %v2290_v57 = vld [vmem:[#allocation4 + $0xf8] sm:$0xff] }
 0x621   :  { %3603 = vrcp.f32 %v1955_v58 }
 0x625   :  { %v3598_v59 = vpop.eup %3597 }
 0x626   :  { %v3600_v60 = vpop.eup %3599  ;;  %v1962_v2 = vadd.f32 1.0, %v3598_v59 }
 0x628   :  { %3605 = vrcp.f32 %v1962_v2 }
 0x62a   :  { %v3602_v61 = vpop.eup %3601 }
 0x62b   :  { %v3604_v62 = vpop.eup %3603  ;;  %v1966_v63 = vmul.f32 %v3602_v61, %v3600_v60 }
 0x62c   :  { %v1965_v3 = vmul.f32 %v3604_v62, %v3964_v32 }
 0x62e   :  { %v3996_v4 = vadd.f32 %v1966_v63, %v1965_v3 }
 0x630   :  { %3607 = vtanh.f32 %v3996_v4 }
 0x632   :  { %v3606_v6 = vpop.eup %3605 }
 0x63a   :  { %v3608_v7 = vpop.eup %3607 }
 0x63b   :  { %v1969_v8 = vmul.f32 %v3608_v7, %v3606_v6 }
 0x63d   :  { %3217 = vmatmul.mubr.msk.f32.vlgmr.msra.gmra.mrb[24].mxu0 %vm50_vm0, %v1969_v8  ;;  %3228 = vmatmul.mubr.msk.f32.vlgmr.msra.gmra.mrb[24].mxu1 %vm50_vm0, %v1969_v8 }
 0x63e   :  { %3465 = vmatpush3.bf16.msra.mxu0 %v3797_v19  ;;  %3471 = vmatpush3.bf16.msra.mxu1 %v3801_v20 }
 0x63f   :  { %3466 = vmatprep.subr.bf16.mxu0 %v3721_v0  ;;  %3472 = vmatprep.subr.bf16.mxu1 %v3721_v0 }
 0x640   :  { %3238 = vmatprep.mubr.msk.f32.mxu0 %vm3723_vm1, %v3722_v1  ;;  %3249 = vmatprep.mubr.msk.f32.mxu1 %vm3723_vm1, %v3722_v1 }
 0x642   :  { %3468 = vmatpush3.bf16.msra.mxu0 %v3807_v25  ;;  %3474 = vmatpush3.bf16.msra.mxu1 %v3811_v26 }
 0x643   :  { %3475 = vmatprep.subr.bf16.mxu0 %v3721_v0  ;;  %3481 = vmatprep.subr.bf16.mxu1 %v3721_v0 }
 0x645   :  { %3239 = vmatmul.mubr.msk.f32.vlgmr.msra.gmra.mrb[26].mxu0 %vm50_vm0, %v1969_v8  ;;  %3250 = vmatmul.mubr.msk.f32.vlgmr.msra.gmra.mrb[26].mxu1 %vm50_vm0, %v1969_v8 }
 0x646   :  { %3477 = vmatpush3.bf16.msra.mxu0 %v3784_v5  ;;  %3483 = vmatpush3.bf16.msra.mxu1 %v3786_v9  ;;  %v1971_v5 = vld [vmem:[#allocation4 + $0xc0] sm:$0xff]  ;;  %v1972_v9 = vld [vmem:[#allocation4 + $0xc8] sm:$0xff] }
 0x647   :  { %3478 = vmatprep.subr.bf16.mxu0 %v3721_v0  ;;  %3484 = vmatprep.subr.bf16.mxu1 %v3721_v0 }
 0x648   :  { %3260 = vmatprep.mubr.msk.f32.mxu0 %vm3723_vm1, %v3722_v1  ;;  %3271 = vmatprep.mubr.msk.f32.mxu1 %vm3723_vm1, %v3722_v1 }
 0x64a   :  { %3480 = vmatpush3.bf16.msra.mxu0 %v3789_v12  ;;  %3486 = vmatpush3.bf16.msra.mxu1 %v3793_v13 }
 0x64b   :  { %3487 = vmatprep.subr.bf16.mxu0 %v3721_v0  ;;  %3493 = vmatprep.subr.bf16.mxu1 %v3721_v0 }
 0x710   :  { %v2044_v10 = vpop.f32.mrb[24].mxu0  ;;  %v2115_v11 = vpop.f32.mrb[24].mxu1 }
 0x711   :  { %v2048_v14 = vadd.f32 %v2044_v10, %v1971_v5  ;;  %v2119_v15 = vadd.f32 %v2115_v11, %v1972_v9  ;;  %v3218_v16 = vpop.f32.mrb[25].mxu0  ;;  %v3229_v17 = vpop.f32.mrb[25].mxu1 }
 0x713   :  { %v2767_v18 = vmul.f32 -1.442695, %v2048_v14  ;;  %v2768_v21 = vmul.f32 -1.442695, %v2119_v15 }
 0x715   :  { %3609 = vpow2.f32 %v2767_v18 }
 0x716   :  { %3611 = vpow2.f32 %v2768_v21 }
 0x718   :  { %v2186_v12 = vpop.f32.mrb[26].mxu0  ;;  %v2257_v23 = vpop.f32.mrb[26].mxu1 }
 0x719   :  { %v2261_v13 = vadd.f32 %v2257_v23, %v1974_v22  ;;  %v3240_v24 = vpop.f32.mrb[27].mxu0  ;;  %v3251_v27 = vpop.f32.mrb[27].mxu1  ;;  %v2190_v30 = vadd.f32 %v2186_v12, %v1973_v28  ;;  %v2777_v22 = vld [vmem:[%s4086_s3] ss:$0 sm:$0xff]  ;;  %s2711_s3 = sshll.u32 %s3724_s22, 4  ;;  %s2712_s3 = int_to_ptr.vmem [resolvable:$true] %s2711_s3 }
 0x71a   :  { %s3689_s23 = scalar_lea.vmem %s2712_s3, 128  ;;  %p3694_p3 = scmp.lt.s32.totalorder %s2712_s3, %s2712_s3 }
 0x71b   :  { %v2769_v29 = vmul.f32 -1.442695, %v2261_v13  ;;  %p3690_p2 = scmp.ne.s32.totalorder %s2712_s3, %s3689_s23  ;;  %p3695_p4 = scmp.lt.s32.totalorder %s3689_s23, %s3689_s23 }
 0x71d   :  { %3613 = vpow2.f32 %v2769_v29  ;;  %p3696_p5 = por %p3695_p4, %p3694_p3 }
 0x71e   :  { %3615 = vtanh.f32 %v2190_v30 }
 0x71f   :  { %v3610_v31 = vpop.eup %3609  ;;  %p3697_p6 = pnand %p3696_p5, %p3690_p2 }
 0x720   :  { %v3612_v32 = vpop.eup %3611  ;;  %v2265_v33 = vadd.f32 1.0, %v3610_v31 }
 0x721   :  { %v2271_v34 = vadd.f32 1.0, %v3612_v32 }
 0x722   :  { %3617 = vrcp.f32 %v2265_v33 }
 0x723   :  { %3619 = vrcp.f32 %v2271_v34 }
 0x727   :  { %v3614_v35 = vpop.eup %3613 }
 0x728   :  { %v3616_v36 = vpop.eup %3615  ;;  %v2278_v40 = vadd.f32 1.0, %v3614_v35 }
 0x72a   :  { %3621 = vrcp.f32 %v2278_v40 }
 0x72c   :  { %v3618_v37 = vpop.eup %3617 }
 0x72d   :  { %v3620_v38 = vpop.eup %3619  ;;  %v2282_v39 = vmul.f32 %v3618_v37, %v3616_v36 }
 0x72e   :  { %v2281_v41 = vmul.f32 %v3620_v38, %v3996_v4 }
 0x730   :  { %v4028_v42 = vadd.f32 %v2282_v39, %v2281_v41 }
 0x732   :  { %3623 = vtanh.f32 %v4028_v42 }
 0x734   :  { %v3622_v43 = vpop.eup %3621 }
 0x73c   :  { %v3624_v44 = vpop.eup %3623 }
 0x73d   :  { %v2285_v45 = vmul.f32 %v3624_v44, %v3622_v43 }
 0x73f   :  { %3261 = vmatmul.mubr.msk.f32.vlgmr.msra.gmra.mrb[28].mxu0 %vm50_vm0, %v2285_v45  ;;  %3272 = vmatmul.mubr.msk.f32.vlgmr.msra.gmra.mrb[28].mxu1 %vm50_vm0, %v2285_v45 }
 0x740   :  { %3489 = vmatpush3.bf16.msra.mxu0 %v3797_v19  ;;  %3495 = vmatpush3.bf16.msra.mxu1 %v3801_v20  ;;  %v2607_v19 = vld [vmem:[%s4085_s2] sm:$0xff]  ;;  %v2608_v20 = vld [vmem:[%s4085_s2 + $0x8] sm:$0xff] }
 0x741   :  { %3490 = vmatprep.subr.bf16.mxu0 %v3721_v0  ;;  %3496 = vmatprep.subr.bf16.mxu1 %v3721_v0 }
 0x742   :  { %3282 = vmatprep.mubr.msk.f32.mxu0 %vm3723_vm1, %v3722_v1  ;;  %3293 = vmatprep.mubr.msk.f32.mxu1 %vm3723_vm1, %v3722_v1 }
 0x744   :  { %3492 = vmatpush3.bf16.msra.mxu0 %v3807_v25  ;;  %3498 = vmatpush3.bf16.msra.mxu1 %v3811_v26  ;;  %v2609_v25 = vld [vmem:[%s4085_s2 + $0x10] sm:$0xff]  ;;  %v3500_v26 = vpack.c.bf16 %v2608_v20, %v2607_v19 }
 0x745   :  { %3499 = vmatprep.subr.bf16.mxu0 %v3721_v0  ;;  %v3503_v47 = vpack.c.bf16 %v2610_v46, %v2609_v25 }
 0x747   :  { %3283 = vmatmul.mubr.msk.f32.vlgmr.msra.gmra.mrb[30].mxu0 %vm50_vm0, %v2285_v45  ;;  %3294 = vmatmul.mubr.msk.f32.vlgmr.msra.gmra.mrb[30].mxu1 %vm50_vm0, %v2285_v45 }
 0x748   :  { %3304 = vmatprep.mubr.msk.f32.mxu0 %vm3723_vm1, %v3722_v1  ;;  %3501 = vmatpush3.bf16.msra.mxu0 %v3500_v26  ;;  %v2287_v1 = vld [vmem:[#allocation4 + $0xe0] sm:$0xff] }
 0x749   :  { %3502 = vmatprep.subr.bf16.mxu0 %v3721_v0  ;;  %v2289_v0 = vld [vmem:[#allocation4 + $0xf0] sm:$0xff] }
 0x74c   :  { %3504 = vmatpush3.bf16.msra.mxu0 %v3503_v47 }
 0x812   :  { %v2360_v49 = vpop.f32.mrb[28].mxu0  ;;  %v2431_v50 = vpop.f32.mrb[28].mxu1 }
 0x813   :  { %v2364_v51 = vadd.f32 %v2360_v49, %v2287_v1  ;;  %v2435_v52 = vadd.f32 %v2431_v50, %v2288_v48  ;;  %v3262_v53 = vpop.f32.mrb[29].mxu0  ;;  %v3273_v54 = vpop.f32.mrb[29].mxu1 }
 0x815   :  { %v2774_v55 = vmul.f32 -1.442695, %v2364_v51  ;;  %v2775_v56 = vmul.f32 -1.442695, %v2435_v52 }
 0x817   :  { %3625 = vpow2.f32 %v2774_v55 }
 0x818   :  { %3627 = vpow2.f32 %v2775_v56 }
 0x81a   :  { %v2502_v58 = vpop.f32.mrb[30].mxu0  ;;  %v2573_v59 = vpop.f32.mrb[30].mxu1 }
 0x81b   :  { %v2577_v60 = vadd.f32 %v2573_v59, %v2290_v57  ;;  %v3284_v61 = vpop.f32.mrb[31].mxu0  ;;  %v3295_v62 = vpop.f32.mrb[31].mxu1  ;;  %v2506_v2 = vadd.f32 %v2502_v58, %v2289_v0 }
 0x81d   :  { %v2776_v63 = vmul.f32 -1.442695, %v2577_v60 }
 0x81f   :  { %3629 = vpow2.f32 %v2776_v63 }
 0x820   :  { %3631 = vtanh.f32 %v2506_v2 }
 0x821   :  { %v3626_v3 = vpop.eup %3625 }
 0x822   :  { %v3628_v4 = vpop.eup %3627  ;;  %v2581_v6 = vadd.f32 1.0, %v3626_v3 }
 0x823   :  { %v2587_v7 = vadd.f32 1.0, %v3628_v4 }
 0x824   :  { %3633 = vrcp.f32 %v2581_v6 }
 0x825   :  { %3635 = vrcp.f32 %v2587_v7 }
 0x829   :  { %v3630_v8 = vpop.eup %3629 }
 0x82a   :  { %v3632_v5 = vpop.eup %3631  ;;  %v2594_v14 = vadd.f32 1.0, %v3630_v8 }
 0x82c   :  { %3637 = vrcp.f32 %v2594_v14 }
 0x82e   :  { %v3634_v9 = vpop.eup %3633 }
 0x82f   :  { %v3636_v10 = vpop.eup %3635  ;;  %v2598_v11 = vmul.f32 %v3634_v9, %v3632_v5 }
 0x830   :  { %v2597_v15 = vmul.f32 %v3636_v10, %v4028_v42 }
 0x832   :  { %v2599_v16 = vadd.f32 %v2598_v11, %v2597_v15 }
 0x834   :  { %3639 = vtanh.f32 %v2599_v16  ;;  %2603 = vst.msk [vmem:[#allocation3] sm:$0xff] %vm50_vm0, %v2599_v16 }
 0x836   :  { %v3638_v17 = vpop.eup %3637 }
 0x83e   :  { %v3640_v18 = vpop.eup %3639 }
 0x83f   :  { %v2601_v21 = vmul.f32 %v3640_v18, %v3638_v17 }
 0x841   :  { %2602 = vst.msk [vmem:[#allocation2] sm:$0xff] %vm50_vm0, %v2601_v21  ;;  %3305 = vmatmul.mubr.msk.f32.vlgmr.msra.gmra.mrb[32].mxu0 %vm50_vm0, %v2601_v21 }
 0x914   :  { %v2687_v12 = vpop.f32.mrb[32].mxu0 }
 0x915   :  { %v2688_v23 = vadd.f32 %v2777_v22, %v2687_v12  ;;  %v3306_v13 = vpop.f32.mrb[33].mxu0 }
 0x917   :  { %v2692_v24 = vsel %vm2691_vm2, %v2688_v23, -inf }
 0x918   :  { %2693 = vmax.xlane.f32.xlu0 %v2692_v24 }
 0x9a5   :  { %v2694_v27 = vpop.xlane.xlu0 %2693 }
 0x9a6   :  { %v2695_v28 = vsub.f32 %v2688_v23, %v2694_v27 }
 0x9a8   :  { %v2696_v29 = vmul.f32 1.442695, %v2695_v28 }
 0x9aa   :  { %3641 = vpow2.f32 %v2696_v29 }
 0x9b4   :  { %v3642_v30 = vpop.eup %3641 }
 0x9b5   :  { %v2698_v31 = vsel %vm2691_vm2, %v3642_v30, 0.0 }
 0x9b6   :  { %2699 = vadd.xlane.f32.xlu0 %v2698_v31 }
 0xa43   :  { %v2700_v32 = vpop.xlane.xlu0 %2699 }
 0xa44   :  { %3643 = vlog2.f32 %v2700_v32 }
 0xa4e   :  { %v3644_v33 = vpop.eup %3643 }
 0xa4f   :  { %v2702_v34 = vmul.f32 0.6931472, %v3644_v33 }
 0xa51   :  { %v2703_v35 = vsub.f32 %v2695_v28, %v2702_v34 }
 0xa53   :  { %2704 = vst.msk [vmem:[#allocation9] sm:$0xff] %vm2691_vm2, %v2703_v35 }
 0xa54   :  { %3700 = shalt.err (!%p3697_p6)
}
 0xa55   :  { %s3701_s26 = scalar_lea.hbm %s4087_s4, 128 }
 0xa56   :  { %p3702_p7 = scmp.ne.s32.totalorder %s4087_s4, %s3701_s26  ;;  %p3705_p8 = scmp.lt.u32.totalorder %s3701_s26, %s4087_s4 }
 0xa58   :  { %p3707_p9 = pnand %p3705_p8, %p3702_p7 }
 0xa5a   :  { %3710 = shalt.err (!%p3707_p9)
}
 0xa5b   :  { %2714 = dma.vmem_to_hbm [thread:$0]  %s2712_s3, 128, %s4087_s4, [#allocation6]  }
 0xa5c   :  { %3715 = dma.done.wait [#allocation6], 128  }
 0xa5d   :  { %3716 = vsyncadd [#allocation6], 4294967168 }
 0xa5e   :  { %2718 = vsyncpa [#allocation5], 1 }
 0xa5f   :  { %2719 = vsyncpa [#allocation8], 1 }
 0xa60   :  { %2720 = vsyncpa [#allocation6], 1 }

</bundles_post_ra>
